<compile_context>
chip_gen: v7x
topology: tpu7x:2x2x1
jax: 0.10.0
libtpu: 0.0.40
codegen_flags: <defaults>
</compile_context>

<pallas_src>
import functools

import numpy as np
import jax
import jax.numpy as jnp
from jax import lax
from jax.experimental import pallas as pl
from jax.experimental.pallas import tpu as pltpu


# ---------------------------------------------------------------------------
# Host-side spatial interpolation data (built once per (W, H) and cached).
# ---------------------------------------------------------------------------
def _pool_matrix(out_size, in_size):
    """1-D adaptive-average-pool matrix, shape (out, in)."""
    P = np.zeros((out_size, in_size), dtype=np.float32)
    for p in range(out_size):
        start = (p * in_size) // out_size
        end = -(-((p + 1) * in_size) // out_size)  # ceil division
        P[p, start:end] = 1.0 / (end - start)
    return P


def _bilinear_matrix(out_size, in_size):
    """1-D bilinear interpolation matrix (align_corners=False), shape (out, in)."""
    scale = in_size / out_size
    U = np.zeros((out_size, in_size), dtype=np.float32)
    for i in range(out_size):
        src = max((i + 0.5) * scale - 0.5, 0.0)
        i0 = min(int(np.floor(src)), in_size - 1)
        i1 = min(i0 + 1, in_size - 1)
        w = src - i0
        U[i, i0] += 1.0 - w
        U[i, i1] += w
    return U


@functools.lru_cache(maxsize=None)
def _spatial_constants(W, H):
    """Constant matmul operands for the (Wp, 2H)-view pipeline.

    p2   (2H, Hp):   0.5 * [Ph^T ; Ph^T]  -> one matmul does the full 2x2 pool.
    uht2 (2Hp, 2H):  blockdiag(Uh^T, Uh^T) -> H-upsamples the even/odd W phases
                     straight into the lane-dense (.., 2H) output layout.
    All weights (0.25 / 0.5 / 0.75 / 1.0) are exactly representable in bf16.
    """
    Wp, Hp = W // 2, H // 2
    ph_t = _pool_matrix(Hp, H).T                          # (H, Hp)
    p2 = 0.5 * np.concatenate([ph_t, ph_t], axis=0)       # (2H, Hp)
    uh_t = _bilinear_matrix(H, Hp).T                      # (Hp, H)
    uht2 = np.zeros((2 * Hp, 2 * H), np.float32)
    uht2[:Hp, :H] = uh_t
    uht2[Hp:, H:] = uh_t
    return jnp.asarray(p2, jnp.bfloat16), jnp.asarray(uht2, jnp.bfloat16)


# ---------------------------------------------------------------------------
# VMEM sizing / batch-block selection.
# ---------------------------------------------------------------------------
def _step_vmem_bytes(TB, C, W, H):
    Wp, Hp = W // 2, H // 2
    Np = Wp * Hp
    io = 4 * TB * C * W * H * 4                 # t, b, m, out f32 blocks
    io_buffered = 2 * io                        # double-buffered pipeline
    weights = (3 * C + 1) * (3 * C) * 2 + (3 * C + 1) * 4 \
        + 2 * H * Hp * 2 + 2 * Hp * 2 * H * 2
    scratch = TB * 3 * C * Np * 2 + TB * C * Wp * 2 * Hp * 2
    temps = (2 * Np * Np * 4                    # energy + p (per element)
             + 8 * C * Np * 4                   # qkv / pv / out_n working values
             + 3 * TB * C * W * H * 4)          # pooling rows + residual temps
    return int(io_buffered + weights + scratch + temps)


def _pick_tb(B, C, W, H, budget_bytes=40 * 1024 * 1024):
    """Largest divisor of B (<=8) that fits the VMEM budget while keeping
    >= 2 grid steps (so the 'parallel' batch axis can feed both TensorCores)."""
    best = 1
    for cand in range(1, min(B, 8) + 1):
        if B % cand:
            continue
        if B >= 2 and B // cand < 2:
            continue
        if _step_vmem_bytes(cand, C, W, H) <= budget_bytes:
            best = cand
    return best


def _vmem_limit_bytes(TB, C, W, H):
    est = _step_vmem_bytes(TB, C, W, H)
    return int(min(max(2 * est, 32 * 1024 * 1024), 96 * 1024 * 1024))


# ---------------------------------------------------------------------------
# Pallas kernel: one grid step processes TB batch elements.
# ---------------------------------------------------------------------------
def _build_kernel(TB, C, W, H):
    Wp, Hp = W // 2, H // 2
    Np = Wp * Hp
    H2 = 2 * H
    R = TB * C * Wp                          # rows at half-W resolution

    def kernel(t_ref, b_ref, m_ref, wqkv_ref, bqkv_ref, p2_ref, uht2_ref,
               o_ref, pool_ref, upin_ref):
        # t/b/m_ref, o_ref : (TB, C, Wp, 2H)   (free view of (TB, C, W, H))
        # wqkv_ref         : (3C+1, 3C) bf16   block-diag(wq, wk, wv) + zero row
        # bqkv_ref         : (3C+1, 1)  f32    [bq ; bk ; bv ; 1.0]
        # p2_ref           : (2H, Hp)   bf16
        # uht2_ref         : (2Hp, 2H)  bf16
        # pool_ref         : (TB, 3C, Np) bf16 VMEM scratch (pooled t/b/m, flat)
        # upin_ref         : (TB, C, Wp, 2Hp) bf16 VMEM scratch (even|odd W phases)

        # ---- Stage 1: 2x2 adaptive avg-pool, ONE matmul per stream ----------
        # Row (tb, c, wp) holds [x[2wp, :H] ; x[2wp+1, :H]] in its 2H lanes, so
        # rows @ p2 pools W and H simultaneously (W window weights are the 0.5
        # baked into p2; exact since W is even).
        for s, x_ref in enumerate((t_ref, b_ref, m_ref)):
            rows = x_ref[...].reshape(R, H2).astype(jnp.bfloat16)
            pooled = lax.dot_general(rows, p2_ref[...],
                                     (((1,), (0,)), ((), ())),
                                     preferred_element_type=jnp.float32)  # (R, Hp)
            pooled4 = pooled.reshape(TB, C, Wp, Hp)
            # Flatten (Wp, Hp) -> Np lanes: Wp wide (TB, C, Hp) lane-block stores.
            for wp in range(Wp):
                pool_ref[:, s * C:(s + 1) * C, wp * Hp:(wp + 1) * Hp] = (
                    pooled4[:, :, wp, :].astype(jnp.bfloat16))

        # ---- Stage 2: fused qkv conv + attention with deferred softmax ------
        for e in range(TB):
            pooled_e = pool_ref[e]                                     # (3C, Np) bf16
            qkv = lax.dot_general(wqkv_ref[...], pooled_e,
                                  (((1,), (0,)), ((), ())),
                                  preferred_element_type=jnp.float32)
            qkv = qkv + bqkv_ref[...]                                  # (3C+1, Np)
            q = qkv[0:C, :].astype(jnp.bfloat16)
            k = qkv[C:2 * C, :].astype(jnp.bfloat16)
            # value rows plus the constant-1.0 row (zero weights, bias 1.0)
            va = qkv[2 * C:3 * C + 1, :].astype(jnp.bfloat16)          # (C+1, Np)

            # energy[i, j] = sum_c q[c, i] * k[c, j]
            energy = lax.dot_general(q, k, (((0,), (0,)), ((), ())),
                                     preferred_element_type=jnp.float32)  # (Np, Np)
            p = jnp.exp(energy - jnp.max(energy, axis=-1, keepdims=True))

            # pv[c, i] = sum_j va[c, j] * p[i, j]; its last row is the softmax
            # row-sum l[i] (deferred normalization: one (C, Np) scale instead of
            # an (Np, Np) multiply).
            pv = lax.dot_general(va, p.astype(jnp.bfloat16),
                                 (((1,), (1,)), ((), ())),
                                 preferred_element_type=jnp.float32)      # (C+1, Np)
            inv_l = pl.reciprocal(pv[C:C + 1, :], approx=True)            # (1, Np)
            out_n = pv[0:C, :] * inv_l                                    # (C, Np)

            # ---- W-direction bilinear (2-tap, edge-clamped) folded into the
            #      un-flatten: lanes [0:Hp] = even W phase, [Hp:2Hp] = odd. ----
            for wp in range(Wp):
                wm = max(wp - 1, 0)
                wn = min(wp + 1, Wp - 1)
                cur = out_n[:, wp * Hp:(wp + 1) * Hp]
                prv = out_n[:, wm * Hp:(wm + 1) * Hp]
                nxt = out_n[:, wn * Hp:(wn + 1) * Hp]
                upin_ref[e, :, wp, 0:Hp] = (
                    0.25 * prv + 0.75 * cur).astype(jnp.bfloat16)
                upin_ref[e, :, wp, Hp:2 * Hp] = (
                    0.75 * cur + 0.25 * nxt).astype(jnp.bfloat16)

        # ---- Stage 3: H-direction bilinear upsample (one matmul), residual,
        #      single lane-dense full-block writeback. -------------------------
        up = lax.dot_general(upin_ref[...].reshape(R, 2 * Hp), uht2_ref[...],
                             (((1,), (0,)), ((), ())),
                             preferred_element_type=jnp.float32)          # (R, 2H)
        ori = t_ref[...] + b_ref[...] + m_ref[...]                        # f32, exact
        o_ref[...] = (up.reshape(TB, C, Wp, H2) + ori).astype(o_ref.dtype)

    return kernel


# ---------------------------------------------------------------------------
# Wrapper
# ---------------------------------------------------------------------------
def self_attn_forward(t, b, m, params, *, tb=None):
    B, C, W, H = t.shape
    assert b.shape == t.shape and m.shape == t.shape
    assert W % 2 == 0 and H % 2 == 0, (
        "Self_Attn Pallas kernel assumes even W and H (exact scale-2 "
        "adaptive pool / bilinear upsample).")
    Wp, Hp = W // 2, H // 2
    Np = Wp * Hp

    wq, bq, wk, bk, wv, bv = params

    # Block-diagonal fused qkv weight + one all-zero row whose bias is 1.0:
    # that row of the qkv output is identically 1, and riding it through the
    # P@V matmul yields the softmax row-sums (deferred normalization).
    wqkv = jnp.zeros((3 * C + 1, 3 * C), jnp.float32)
    wqkv = wqkv.at[0:C, 0:C].set(wq)
    wqkv = wqkv.at[C:2 * C, C:2 * C].set(wk)
    wqkv = wqkv.at[2 * C:3 * C, 2 * C:3 * C].set(wv)
    wqkv = wqkv.astype(jnp.bfloat16)
    bqkv = jnp.concatenate(
        [bq, bk, bv, jnp.ones((1,), jnp.float32)]).reshape(3 * C + 1, 1)
    bqkv = bqkv.astype(jnp.float32)

    p2, uht2 = _spatial_constants(W, H)

    TB = _pick_tb(B, C, W, H) if tb is None else int(tb)
    assert B % TB == 0, "batch-block TB must divide B"

    # Free (metadata-only) reshapes: (B, C, W, H) -> (B, C, W/2, 2H).
    t2 = t.reshape(B, C, Wp, 2 * H)
    b2 = b.reshape(B, C, Wp, 2 * H)
    m2 = m.reshape(B, C, Wp, 2 * H)

    kernel = _build_kernel(TB, C, W, H)

    out = pl.pallas_call(
        kernel,
        out_shape=jax.ShapeDtypeStruct((B, C, Wp, 2 * H), t.dtype),
        grid_spec=pltpu.PrefetchScalarGridSpec(
            num_scalar_prefetch=0,
            grid=(B // TB,),
            in_specs=[
                pl.BlockSpec((TB, C, Wp, 2 * H), lambda i: (i, 0, 0, 0)),
                pl.BlockSpec((TB, C, Wp, 2 * H), lambda i: (i, 0, 0, 0)),
                pl.BlockSpec((TB, C, Wp, 2 * H), lambda i: (i, 0, 0, 0)),
                pl.BlockSpec((3 * C + 1, 3 * C), lambda i: (0, 0)),
                pl.BlockSpec((3 * C + 1, 1), lambda i: (0, 0)),
                pl.BlockSpec((2 * H, Hp), lambda i: (0, 0)),
                pl.BlockSpec((2 * Hp, 2 * H), lambda i: (0, 0)),
            ],
            out_specs=pl.BlockSpec((TB, C, Wp, 2 * H), lambda i: (i, 0, 0, 0)),
            scratch_shapes=[
                pltpu.VMEM((TB, 3 * C, Np), jnp.bfloat16),      # pooled t|b|m, flat
                pltpu.VMEM((TB, C, Wp, 2 * Hp), jnp.bfloat16),  # even|odd W phases
            ],
        ),
        compiler_params=pltpu.CompilerParams(
            dimension_semantics=("parallel",),
            vmem_limit_bytes=_vmem_limit_bytes(TB, C, W, H)),
    )(t2, b2, m2, wqkv, bqkv, p2, uht2)

    return out.reshape(B, C, W, H)


# ---------------------------------------------------------------------------
# Pure-JAX f32 reference (same math as the PyTorch module) for correctness.
# ---------------------------------------------------------------------------
def reference_forward(t, b, m, params):
    wq, bq, wk, bk, wv, bv = params
    B, C, W, H = t.shape
    Wp, Hp = W // 2, H // 2
    Pw = jnp.asarray(_pool_matrix(Wp, W))
    Ph = jnp.asarray(_pool_matrix(Hp, H))
    Uw = jnp.asarray(_bilinear_matrix(W, Wp))
    Uh = jnp.asarray(_bilinear_matrix(H, Hp))

    def pool(z):
        return jnp.einsum('pw,bcwh,qh->bcpq', Pw, z, Ph)

    ori = t + b + m
    tp = pool(t).reshape(B, C, Wp * Hp)
    bp = pool(b).reshape(B, C, Wp * Hp)
    mp = pool(m).reshape(B, C, Wp * Hp)
    q = jnp.einsum('oc,bcn->bon', wq, tp) + bq[None, :, None]
    k = jnp.einsum('oc,bcn->bon', wk, bp) + bk[None, :, None]
    v = jnp.einsum('oc,bcn->bon', wv, mp) + bv[None, :, None]
    energy = jnp.einsum('bci,bcj->bij', q, k)
    attn = jax.nn.softmax(energy, axis=-1)
    out = jnp.einsum('bcj,bij->bci', v, attn).reshape(B, C, Wp, Hp)
    up = jnp.einsum('wp,bcpq,hq->bcwh', Uw, out, Uh)
    return up + ori


if __name__ == "__main__":
    B, C, W, H = 2, 4, 16, 16

    key = jax.random.PRNGKey(0)
    kt, kb, km, k1, k2, k3, k4, k5, k6 = jax.random.split(key, 9)

    t = jax.random.normal(kt, (B, C, W, H), jnp.float32)
    b = jax.random.normal(kb, (B, C, W, H), jnp.float32)
    m = jax.random.normal(km, (B, C, W, H), jnp.float32)

    # Conv2d(in=C, out=C, kernel_size=1) weights as (C, C) + bias (C,)
    bound = 1.0 / np.sqrt(C)
    wq = jax.random.uniform(k1, (C, C), jnp.float32, -bound, bound)
    bq = jax.random.uniform(k2, (C,), jnp.float32, -bound, bound)
    wk = jax.random.uniform(k3, (C, C), jnp.float32, -bound, bound)
    bk = jax.random.uniform(k4, (C,), jnp.float32, -bound, bound)
    wv = jax.random.uniform(k5, (C, C), jnp.float32, -bound, bound)
    bv = jax.random.uniform(k6, (C,), jnp.float32, -bound, bound)
    params = (wq, bq, wk, bk, wv, bv)

    out = self_attn_forward(t, b, m, params)
    jax.block_until_ready(out)

    ref = reference_forward(t, b, m, params)
    # Tolerance covers the bf16 MXU operands + approx reciprocal vs. the f32
    # reference (interpolation weights themselves are exact in bf16).
    np.testing.assert_allclose(np.asarray(out), np.asarray(ref), atol=3e-2, rtol=3e-2)

    print("KERNEL_OK")
</pallas_src>

<mosaic_0001>
module attributes {stable_mosaic.version = 11 : i64} {
  func.func @kernel(%arg0: i32, %arg1: memref<1x4x8x32xf32, #tpu.memory_space<vmem>>, %arg2: memref<1x4x8x32xf32, #tpu.memory_space<vmem>>, %arg3: memref<1x4x8x32xf32, #tpu.memory_space<vmem>>, %arg4: memref<13x12xbf16, #tpu.memory_space<vmem>>, %arg5: memref<13x1xf32, #tpu.memory_space<vmem>>, %arg6: memref<32x8xbf16, #tpu.memory_space<vmem>>, %arg7: memref<16x32xbf16, #tpu.memory_space<vmem>>, %arg8: memref<1x4x8x32xf32, #tpu.memory_space<vmem>>, %arg9: memref<1x12x64xbf16, #tpu.memory_space<vmem>>, %arg10: memref<1x4x8x16xbf16, #tpu.memory_space<vmem>>) attributes {dimension_semantics = [#tpu.dimension_semantics<parallel>], iteration_bounds = array<i64: 2>, scalar_prefetch = 0 : i64, scratch_operands = 2 : i64, tpu.core_type = #tpu.core_type<tc>, window_params = [{transform_indices = @transform_0, window_bounds = array<i64: 1, 4, 8, 32>}, {transform_indices = @transform_1, window_bounds = array<i64: 1, 4, 8, 32>}, {transform_indices = @transform_2, window_bounds = array<i64: 1, 4, 8, 32>}, {pipeline_mode = #tpu.pipeline_mode<synchronous>, transform_indices = @transform_3, window_bounds = array<i64: 13, 12>}, {pipeline_mode = #tpu.pipeline_mode<synchronous>, transform_indices = @transform_4, window_bounds = array<i64: 13, 1>}, {pipeline_mode = #tpu.pipeline_mode<synchronous>, transform_indices = @transform_5, window_bounds = array<i64: 32, 8>}, {pipeline_mode = #tpu.pipeline_mode<synchronous>, transform_indices = @transform_6, window_bounds = array<i64: 16, 32>}, {transform_indices = @transform_7, window_bounds = array<i64: 1, 4, 8, 32>}]} {
    %c0 = arith.constant 0 : index
    %c0_0 = arith.constant 0 : index
    %c0_1 = arith.constant 0 : index
    %c0_2 = arith.constant 0 : index
    %0 = vector.load %arg1[%c0, %c0_0, %c0_1, %c0_2] : memref<1x4x8x32xf32, #tpu.memory_space<vmem>>, vector<1x4x8x32xf32>
    %1 = vector.shape_cast %0 : vector<1x4x8x32xf32> to vector<32x32xf32>
    %2 = arith.truncf %1 : vector<32x32xf32> to vector<32x32xbf16>
    %c0_3 = arith.constant 0 : index
    %c0_4 = arith.constant 0 : index
    %3 = vector.load %arg6[%c0_3, %c0_4] : memref<32x8xbf16, #tpu.memory_space<vmem>>, vector<32x8xbf16>
    %cst = arith.constant dense<0.000000e+00> : vector<32x8xf32>
    %4 = tpu.matmul %2, %3, %cst {dimension_numbers = #tpu.dot_dimension_numbers<[1], [0], [0], [1], [0, 0, 1, 1], [], []>} : vector<32x32xbf16>, vector<32x8xbf16>, vector<32x8xf32> -> vector<32x8xf32>
    %5 = vector.shape_cast %4 : vector<32x8xf32> to vector<1x4x8x8xf32>
    %6 = vector.extract_strided_slice %5 {offsets = [0, 0, 0, 0], sizes = [1, 4, 1, 8], strides = [1, 1, 1, 1]} : vector<1x4x8x8xf32> to vector<1x4x1x8xf32>
    %7 = vector.shape_cast %6 : vector<1x4x1x8xf32> to vector<1x4x8xf32>
    %8 = arith.truncf %7 : vector<1x4x8xf32> to vector<1x4x8xbf16>
    %c0_5 = arith.constant 0 : index
    %c0_6 = arith.constant 0 : index
    %c0_7 = arith.constant 0 : index
    %9 = vector.load %arg9[%c0_5, %c0_6, %c0_7] : memref<1x12x64xbf16, #tpu.memory_space<vmem>>, vector<1x4x8xbf16>
    tpu.vector_store %arg9[%c0_5, %c0_6, %c0_7], %8 {strides = array<i32>} : memref<1x12x64xbf16, #tpu.memory_space<vmem>>, vector<1x4x8xbf16>,
    %10 = vector.extract_strided_slice %5 {offsets = [0, 0, 1, 0], sizes = [1, 4, 1, 8], strides = [1, 1, 1, 1]} : vector<1x4x8x8xf32> to vector<1x4x1x8xf32>
    %11 = vector.shape_cast %10 : vector<1x4x1x8xf32> to vector<1x4x8xf32>
    %12 = arith.truncf %11 : vector<1x4x8xf32> to vector<1x4x8xbf16>
    %c0_8 = arith.constant 0 : index
    %c0_9 = arith.constant 0 : index
    %c8 = arith.constant 8 : index
    %13 = vector.load %arg9[%c0_8, %c0_9, %c8] : memref<1x12x64xbf16, #tpu.memory_space<vmem>>, vector<1x4x8xbf16>
    tpu.vector_store %arg9[%c0_8, %c0_9, %c8], %12 {strides = array<i32>} : memref<1x12x64xbf16, #tpu.memory_space<vmem>>, vector<1x4x8xbf16>,
    %14 = vector.extract_strided_slice %5 {offsets = [0, 0, 2, 0], sizes = [1, 4, 1, 8], strides = [1, 1, 1, 1]} : vector<1x4x8x8xf32> to vector<1x4x1x8xf32>
    %15 = vector.shape_cast %14 : vector<1x4x1x8xf32> to vector<1x4x8xf32>
    %16 = arith.truncf %15 : vector<1x4x8xf32> to vector<1x4x8xbf16>
    %c0_10 = arith.constant 0 : index
    %c0_11 = arith.constant 0 : index
    %c16 = arith.constant 16 : index
    %17 = vector.load %arg9[%c0_10, %c0_11, %c16] : memref<1x12x64xbf16, #tpu.memory_space<vmem>>, vector<1x4x8xbf16>
    tpu.vector_store %arg9[%c0_10, %c0_11, %c16], %16 {strides = array<i32>} : memref<1x12x64xbf16, #tpu.memory_space<vmem>>, vector<1x4x8xbf16>,
    %18 = vector.extract_strided_slice %5 {offsets = [0, 0, 3, 0], sizes = [1, 4, 1, 8], strides = [1, 1, 1, 1]} : vector<1x4x8x8xf32> to vector<1x4x1x8xf32>
    %19 = vector.shape_cast %18 : vector<1x4x1x8xf32> to vector<1x4x8xf32>
    %20 = arith.truncf %19 : vector<1x4x8xf32> to vector<1x4x8xbf16>
    %c0_12 = arith.constant 0 : index
    %c0_13 = arith.constant 0 : index
    %c24 = arith.constant 24 : index
    %21 = vector.load %arg9[%c0_12, %c0_13, %c24] : memref<1x12x64xbf16, #tpu.memory_space<vmem>>, vector<1x4x8xbf16>
    tpu.vector_store %arg9[%c0_12, %c0_13, %c24], %20 {strides = array<i32>} : memref<1x12x64xbf16, #tpu.memory_space<vmem>>, vector<1x4x8xbf16>,
    %22 = vector.extract_strided_slice %5 {offsets = [0, 0, 4, 0], sizes = [1, 4, 1, 8], strides = [1, 1, 1, 1]} : vector<1x4x8x8xf32> to vector<1x4x1x8xf32>
    %23 = vector.shape_cast %22 : vector<1x4x1x8xf32> to vector<1x4x8xf32>
    %24 = arith.truncf %23 : vector<1x4x8xf32> to vector<1x4x8xbf16>
    %c0_14 = arith.constant 0 : index
    %c0_15 = arith.constant 0 : index
    %c32 = arith.constant 32 : index
    %25 = vector.load %arg9[%c0_14, %c0_15, %c32] : memref<1x12x64xbf16, #tpu.memory_space<vmem>>, vector<1x4x8xbf16>
    tpu.vector_store %arg9[%c0_14, %c0_15, %c32], %24 {strides = array<i32>} : memref<1x12x64xbf16, #tpu.memory_space<vmem>>, vector<1x4x8xbf16>,
    %26 = vector.extract_strided_slice %5 {offsets = [0, 0, 5, 0], sizes = [1, 4, 1, 8], strides = [1, 1, 1, 1]} : vector<1x4x8x8xf32> to vector<1x4x1x8xf32>
    %27 = vector.shape_cast %26 : vector<1x4x1x8xf32> to vector<1x4x8xf32>
    %28 = arith.truncf %27 : vector<1x4x8xf32> to vector<1x4x8xbf16>
    %c0_16 = arith.constant 0 : index
    %c0_17 = arith.constant 0 : index
    %c40 = arith.constant 40 : index
    %29 = vector.load %arg9[%c0_16, %c0_17, %c40] : memref<1x12x64xbf16, #tpu.memory_space<vmem>>, vector<1x4x8xbf16>
    tpu.vector_store %arg9[%c0_16, %c0_17, %c40], %28 {strides = array<i32>} : memref<1x12x64xbf16, #tpu.memory_space<vmem>>, vector<1x4x8xbf16>,
    %30 = vector.extract_strided_slice %5 {offsets = [0, 0, 6, 0], sizes = [1, 4, 1, 8], strides = [1, 1, 1, 1]} : vector<1x4x8x8xf32> to vector<1x4x1x8xf32>
    %31 = vector.shape_cast %30 : vector<1x4x1x8xf32> to vector<1x4x8xf32>
    %32 = arith.truncf %31 : vector<1x4x8xf32> to vector<1x4x8xbf16>
    %c0_18 = arith.constant 0 : index
    %c0_19 = arith.constant 0 : index
    %c48 = arith.constant 48 : index
    %33 = vector.load %arg9[%c0_18, %c0_19, %c48] : memref<1x12x64xbf16, #tpu.memory_space<vmem>>, vector<1x4x8xbf16>
    tpu.vector_store %arg9[%c0_18, %c0_19, %c48], %32 {strides = array<i32>} : memref<1x12x64xbf16, #tpu.memory_space<vmem>>, vector<1x4x8xbf16>,
    %34 = vector.extract_strided_slice %5 {offsets = [0, 0, 7, 0], sizes = [1, 4, 1, 8], strides = [1, 1, 1, 1]} : vector<1x4x8x8xf32> to vector<1x4x1x8xf32>
    %35 = vector.shape_cast %34 : vector<1x4x1x8xf32> to vector<1x4x8xf32>
    %36 = arith.truncf %35 : vector<1x4x8xf32> to vector<1x4x8xbf16>
    %c0_20 = arith.constant 0 : index
    %c0_21 = arith.constant 0 : index
    %c56 = arith.constant 56 : index
    %37 = vector.load %arg9[%c0_20, %c0_21, %c56] : memref<1x12x64xbf16, #tpu.memory_space<vmem>>, vector<1x4x8xbf16>
    tpu.vector_store %arg9[%c0_20, %c0_21, %c56], %36 {strides = array<i32>} : memref<1x12x64xbf16, #tpu.memory_space<vmem>>, vector<1x4x8xbf16>,
    %c0_22 = arith.constant 0 : index
    %c0_23 = arith.constant 0 : index
    %c0_24 = arith.constant 0 : index
    %c0_25 = arith.constant 0 : index
    %38 = vector.load %arg2[%c0_22, %c0_23, %c0_24, %c0_25] : memref<1x4x8x32xf32, #tpu.memory_space<vmem>>, vector<1x4x8x32xf32>
    %39 = vector.shape_cast %38 : vector<1x4x8x32xf32> to vector<32x32xf32>
    %40 = arith.truncf %39 : vector<32x32xf32> to vector<32x32xbf16>
    %c0_26 = arith.constant 0 : index
    %c0_27 = arith.constant 0 : index
    %41 = vector.load %arg6[%c0_26, %c0_27] : memref<32x8xbf16, #tpu.memory_space<vmem>>, vector<32x8xbf16>
    %cst_28 = arith.constant dense<0.000000e+00> : vector<32x8xf32>
    %42 = tpu.matmul %40, %41, %cst_28 {dimension_numbers = #tpu.dot_dimension_numbers<[1], [0], [0], [1], [0, 0, 1, 1], [], []>} : vector<32x32xbf16>, vector<32x8xbf16>, vector<32x8xf32> -> vector<32x8xf32>
    %43 = vector.shape_cast %42 : vector<32x8xf32> to vector<1x4x8x8xf32>
    %44 = vector.extract_strided_slice %43 {offsets = [0, 0, 0, 0], sizes = [1, 4, 1, 8], strides = [1, 1, 1, 1]} : vector<1x4x8x8xf32> to vector<1x4x1x8xf32>
    %45 = vector.shape_cast %44 : vector<1x4x1x8xf32> to vector<1x4x8xf32>
    %46 = arith.truncf %45 : vector<1x4x8xf32> to vector<1x4x8xbf16>
    %c0_29 = arith.constant 0 : index
    %c4 = arith.constant 4 : index
    %c0_30 = arith.constant 0 : index
    %47 = vector.load %arg9[%c0_29, %c4, %c0_30] : memref<1x12x64xbf16, #tpu.memory_space<vmem>>, vector<1x4x8xbf16>
    tpu.vector_store %arg9[%c0_29, %c4, %c0_30], %46 {strides = array<i32>} : memref<1x12x64xbf16, #tpu.memory_space<vmem>>, vector<1x4x8xbf16>,
    %48 = vector.extract_strided_slice %43 {offsets = [0, 0, 1, 0], sizes = [1, 4, 1, 8], strides = [1, 1, 1, 1]} : vector<1x4x8x8xf32> to vector<1x4x1x8xf32>
    %49 = vector.shape_cast %48 : vector<1x4x1x8xf32> to vector<1x4x8xf32>
    %50 = arith.truncf %49 : vector<1x4x8xf32> to vector<1x4x8xbf16>
    %c0_31 = arith.constant 0 : index
    %c4_32 = arith.constant 4 : index
    %c8_33 = arith.constant 8 : index
    %51 = vector.load %arg9[%c0_31, %c4_32, %c8_33] : memref<1x12x64xbf16, #tpu.memory_space<vmem>>, vector<1x4x8xbf16>
    tpu.vector_store %arg9[%c0_31, %c4_32, %c8_33], %50 {strides = array<i32>} : memref<1x12x64xbf16, #tpu.memory_space<vmem>>, vector<1x4x8xbf16>,
    %52 = vector.extract_strided_slice %43 {offsets = [0, 0, 2, 0], sizes = [1, 4, 1, 8], strides = [1, 1, 1, 1]} : vector<1x4x8x8xf32> to vector<1x4x1x8xf32>
    %53 = vector.shape_cast %52 : vector<1x4x1x8xf32> to vector<1x4x8xf32>
    %54 = arith.truncf %53 : vector<1x4x8xf32> to vector<1x4x8xbf16>
    %c0_34 = arith.constant 0 : index
    %c4_35 = arith.constant 4 : index
    %c16_36 = arith.constant 16 : index
    %55 = vector.load %arg9[%c0_34, %c4_35, %c16_36] : memref<1x12x64xbf16, #tpu.memory_space<vmem>>, vector<1x4x8xbf16>
    tpu.vector_store %arg9[%c0_34, %c4_35, %c16_36], %54 {strides = array<i32>} : memref<1x12x64xbf16, #tpu.memory_space<vmem>>, vector<1x4x8xbf16>,
    %56 = vector.extract_strided_slice %43 {offsets = [0, 0, 3, 0], sizes = [1, 4, 1, 8], strides = [1, 1, 1, 1]} : vector<1x4x8x8xf32> to vector<1x4x1x8xf32>
    %57 = vector.shape_cast %56 : vector<1x4x1x8xf32> to vector<1x4x8xf32>
    %58 = arith.truncf %57 : vector<1x4x8xf32> to vector<1x4x8xbf16>
    %c0_37 = arith.constant 0 : index
    %c4_38 = arith.constant 4 : index
    %c24_39 = arith.constant 24 : index
    %59 = vector.load %arg9[%c0_37, %c4_38, %c24_39] : memref<1x12x64xbf16, #tpu.memory_space<vmem>>, vector<1x4x8xbf16>
    tpu.vector_store %arg9[%c0_37, %c4_38, %c24_39], %58 {strides = array<i32>} : memref<1x12x64xbf16, #tpu.memory_space<vmem>>, vector<1x4x8xbf16>,
    %60 = vector.extract_strided_slice %43 {offsets = [0, 0, 4, 0], sizes = [1, 4, 1, 8], strides = [1, 1, 1, 1]} : vector<1x4x8x8xf32> to vector<1x4x1x8xf32>
    %61 = vector.shape_cast %60 : vector<1x4x1x8xf32> to vector<1x4x8xf32>
    %62 = arith.truncf %61 : vector<1x4x8xf32> to vector<1x4x8xbf16>
    %c0_40 = arith.constant 0 : index
    %c4_41 = arith.constant 4 : index
    %c32_42 = arith.constant 32 : index
    %63 = vector.load %arg9[%c0_40, %c4_41, %c32_42] : memref<1x12x64xbf16, #tpu.memory_space<vmem>>, vector<1x4x8xbf16>
    tpu.vector_store %arg9[%c0_40, %c4_41, %c32_42], %62 {strides = array<i32>} : memref<1x12x64xbf16, #tpu.memory_space<vmem>>, vector<1x4x8xbf16>,
    %64 = vector.extract_strided_slice %43 {offsets = [0, 0, 5, 0], sizes = [1, 4, 1, 8], strides = [1, 1, 1, 1]} : vector<1x4x8x8xf32> to vector<1x4x1x8xf32>
    %65 = vector.shape_cast %64 : vector<1x4x1x8xf32> to vector<1x4x8xf32>
    %66 = arith.truncf %65 : vector<1x4x8xf32> to vector<1x4x8xbf16>
    %c0_43 = arith.constant 0 : index
    %c4_44 = arith.constant 4 : index
    %c40_45 = arith.constant 40 : index
    %67 = vector.load %arg9[%c0_43, %c4_44, %c40_45] : memref<1x12x64xbf16, #tpu.memory_space<vmem>>, vector<1x4x8xbf16>
    tpu.vector_store %arg9[%c0_43, %c4_44, %c40_45], %66 {strides = array<i32>} : memref<1x12x64xbf16, #tpu.memory_space<vmem>>, vector<1x4x8xbf16>,
    %68 = vector.extract_strided_slice %43 {offsets = [0, 0, 6, 0], sizes = [1, 4, 1, 8], strides = [1, 1, 1, 1]} : vector<1x4x8x8xf32> to vector<1x4x1x8xf32>
    %69 = vector.shape_cast %68 : vector<1x4x1x8xf32> to vector<1x4x8xf32>
    %70 = arith.truncf %69 : vector<1x4x8xf32> to vector<1x4x8xbf16>
    %c0_46 = arith.constant 0 : index
    %c4_47 = arith.constant 4 : index
    %c48_48 = arith.constant 48 : index
    %71 = vector.load %arg9[%c0_46, %c4_47, %c48_48] : memref<1x12x64xbf16, #tpu.memory_space<vmem>>, vector<1x4x8xbf16>
    tpu.vector_store %arg9[%c0_46, %c4_47, %c48_48], %70 {strides = array<i32>} : memref<1x12x64xbf16, #tpu.memory_space<vmem>>, vector<1x4x8xbf16>,
    %72 = vector.extract_strided_slice %43 {offsets = [0, 0, 7, 0], sizes = [1, 4, 1, 8], strides = [1, 1, 1, 1]} : vector<1x4x8x8xf32> to vector<1x4x1x8xf32>
    %73 = vector.shape_cast %72 : vector<1x4x1x8xf32> to vector<1x4x8xf32>
    %74 = arith.truncf %73 : vector<1x4x8xf32> to vector<1x4x8xbf16>
    %c0_49 = arith.constant 0 : index
    %c4_50 = arith.constant 4 : index
    %c56_51 = arith.constant 56 : index
    %75 = vector.load %arg9[%c0_49, %c4_50, %c56_51] : memref<1x12x64xbf16, #tpu.memory_space<vmem>>, vector<1x4x8xbf16>
    tpu.vector_store %arg9[%c0_49, %c4_50, %c56_51], %74 {strides = array<i32>} : memref<1x12x64xbf16, #tpu.memory_space<vmem>>, vector<1x4x8xbf16>,
    %c0_52 = arith.constant 0 : index
    %c0_53 = arith.constant 0 : index
    %c0_54 = arith.constant 0 : index
    %c0_55 = arith.constant 0 : index
    %76 = vector.load %arg3[%c0_52, %c0_53, %c0_54, %c0_55] : memref<1x4x8x32xf32, #tpu.memory_space<vmem>>, vector<1x4x8x32xf32>
    %77 = vector.shape_cast %76 : vector<1x4x8x32xf32> to vector<32x32xf32>
    %78 = arith.truncf %77 : vector<32x32xf32> to vector<32x32xbf16>
    %c0_56 = arith.constant 0 : index
    %c0_57 = arith.constant 0 : index
    %79 = vector.load %arg6[%c0_56, %c0_57] : memref<32x8xbf16, #tpu.memory_space<vmem>>, vector<32x8xbf16>
    %cst_58 = arith.constant dense<0.000000e+00> : vector<32x8xf32>
    %80 = tpu.matmul %78, %79, %cst_58 {dimension_numbers = #tpu.dot_dimension_numbers<[1], [0], [0], [1], [0, 0, 1, 1], [], []>} : vector<32x32xbf16>, vector<32x8xbf16>, vector<32x8xf32> -> vector<32x8xf32>
    %81 = vector.shape_cast %80 : vector<32x8xf32> to vector<1x4x8x8xf32>
    %82 = vector.extract_strided_slice %81 {offsets = [0, 0, 0, 0], sizes = [1, 4, 1, 8], strides = [1, 1, 1, 1]} : vector<1x4x8x8xf32> to vector<1x4x1x8xf32>
    %83 = vector.shape_cast %82 : vector<1x4x1x8xf32> to vector<1x4x8xf32>
    %84 = arith.truncf %83 : vector<1x4x8xf32> to vector<1x4x8xbf16>
    %c0_59 = arith.constant 0 : index
    %c8_60 = arith.constant 8 : index
    %c0_61 = arith.constant 0 : index
    %85 = vector.load %arg9[%c0_59, %c8_60, %c0_61] : memref<1x12x64xbf16, #tpu.memory_space<vmem>>, vector<1x4x8xbf16>
    tpu.vector_store %arg9[%c0_59, %c8_60, %c0_61], %84 {strides = array<i32>} : memref<1x12x64xbf16, #tpu.memory_space<vmem>>, vector<1x4x8xbf16>,
    %86 = vector.extract_strided_slice %81 {offsets = [0, 0, 1, 0], sizes = [1, 4, 1, 8], strides = [1, 1, 1, 1]} : vector<1x4x8x8xf32> to vector<1x4x1x8xf32>
    %87 = vector.shape_cast %86 : vector<1x4x1x8xf32> to vector<1x4x8xf32>
    %88 = arith.truncf %87 : vector<1x4x8xf32> to vector<1x4x8xbf16>
    %c0_62 = arith.constant 0 : index
    %c8_63 = arith.constant 8 : index
    %c8_64 = arith.constant 8 : index
    %89 = vector.load %arg9[%c0_62, %c8_63, %c8_64] : memref<1x12x64xbf16, #tpu.memory_space<vmem>>, vector<1x4x8xbf16>
    tpu.vector_store %arg9[%c0_62, %c8_63, %c8_64], %88 {strides = array<i32>} : memref<1x12x64xbf16, #tpu.memory_space<vmem>>, vector<1x4x8xbf16>,
    %90 = vector.extract_strided_slice %81 {offsets = [0, 0, 2, 0], sizes = [1, 4, 1, 8], strides = [1, 1, 1, 1]} : vector<1x4x8x8xf32> to vector<1x4x1x8xf32>
    %91 = vector.shape_cast %90 : vector<1x4x1x8xf32> to vector<1x4x8xf32>
    %92 = arith.truncf %91 : vector<1x4x8xf32> to vector<1x4x8xbf16>
    %c0_65 = arith.constant 0 : index
    %c8_66 = arith.constant 8 : index
    %c16_67 = arith.constant 16 : index
    %93 = vector.load %arg9[%c0_65, %c8_66, %c16_67] : memref<1x12x64xbf16, #tpu.memory_space<vmem>>, vector<1x4x8xbf16>
    tpu.vector_store %arg9[%c0_65, %c8_66, %c16_67], %92 {strides = array<i32>} : memref<1x12x64xbf16, #tpu.memory_space<vmem>>, vector<1x4x8xbf16>,
    %94 = vector.extract_strided_slice %81 {offsets = [0, 0, 3, 0], sizes = [1, 4, 1, 8], strides = [1, 1, 1, 1]} : vector<1x4x8x8xf32> to vector<1x4x1x8xf32>
    %95 = vector.shape_cast %94 : vector<1x4x1x8xf32> to vector<1x4x8xf32>
    %96 = arith.truncf %95 : vector<1x4x8xf32> to vector<1x4x8xbf16>
    %c0_68 = arith.constant 0 : index
    %c8_69 = arith.constant 8 : index
    %c24_70 = arith.constant 24 : index
    %97 = vector.load %arg9[%c0_68, %c8_69, %c24_70] : memref<1x12x64xbf16, #tpu.memory_space<vmem>>, vector<1x4x8xbf16>
    tpu.vector_store %arg9[%c0_68, %c8_69, %c24_70], %96 {strides = array<i32>} : memref<1x12x64xbf16, #tpu.memory_space<vmem>>, vector<1x4x8xbf16>,
    %98 = vector.extract_strided_slice %81 {offsets = [0, 0, 4, 0], sizes = [1, 4, 1, 8], strides = [1, 1, 1, 1]} : vector<1x4x8x8xf32> to vector<1x4x1x8xf32>
    %99 = vector.shape_cast %98 : vector<1x4x1x8xf32> to vector<1x4x8xf32>
    %100 = arith.truncf %99 : vector<1x4x8xf32> to vector<1x4x8xbf16>
    %c0_71 = arith.constant 0 : index
    %c8_72 = arith.constant 8 : index
    %c32_73 = arith.constant 32 : index
    %101 = vector.load %arg9[%c0_71, %c8_72, %c32_73] : memref<1x12x64xbf16, #tpu.memory_space<vmem>>, vector<1x4x8xbf16>
    tpu.vector_store %arg9[%c0_71, %c8_72, %c32_73], %100 {strides = array<i32>} : memref<1x12x64xbf16, #tpu.memory_space<vmem>>, vector<1x4x8xbf16>,
    %102 = vector.extract_strided_slice %81 {offsets = [0, 0, 5, 0], sizes = [1, 4, 1, 8], strides = [1, 1, 1, 1]} : vector<1x4x8x8xf32> to vector<1x4x1x8xf32>
    %103 = vector.shape_cast %102 : vector<1x4x1x8xf32> to vector<1x4x8xf32>
    %104 = arith.truncf %103 : vector<1x4x8xf32> to vector<1x4x8xbf16>
    %c0_74 = arith.constant 0 : index
    %c8_75 = arith.constant 8 : index
    %c40_76 = arith.constant 40 : index
    %105 = vector.load %arg9[%c0_74, %c8_75, %c40_76] : memref<1x12x64xbf16, #tpu.memory_space<vmem>>, vector<1x4x8xbf16>
    tpu.vector_store %arg9[%c0_74, %c8_75, %c40_76], %104 {strides = array<i32>} : memref<1x12x64xbf16, #tpu.memory_space<vmem>>, vector<1x4x8xbf16>,
    %106 = vector.extract_strided_slice %81 {offsets = [0, 0, 6, 0], sizes = [1, 4, 1, 8], strides = [1, 1, 1, 1]} : vector<1x4x8x8xf32> to vector<1x4x1x8xf32>
    %107 = vector.shape_cast %106 : vector<1x4x1x8xf32> to vector<1x4x8xf32>
    %108 = arith.truncf %107 : vector<1x4x8xf32> to vector<1x4x8xbf16>
    %c0_77 = arith.constant 0 : index
    %c8_78 = arith.constant 8 : index
    %c48_79 = arith.constant 48 : index
    %109 = vector.load %arg9[%c0_77, %c8_78, %c48_79] : memref<1x12x64xbf16, #tpu.memory_space<vmem>>, vector<1x4x8xbf16>
    tpu.vector_store %arg9[%c0_77, %c8_78, %c48_79], %108 {strides = array<i32>} : memref<1x12x64xbf16, #tpu.memory_space<vmem>>, vector<1x4x8xbf16>,
    %110 = vector.extract_strided_slice %81 {offsets = [0, 0, 7, 0], sizes = [1, 4, 1, 8], strides = [1, 1, 1, 1]} : vector<1x4x8x8xf32> to vector<1x4x1x8xf32>
    %111 = vector.shape_cast %110 : vector<1x4x1x8xf32> to vector<1x4x8xf32>
    %112 = arith.truncf %111 : vector<1x4x8xf32> to vector<1x4x8xbf16>
    %c0_80 = arith.constant 0 : index
    %c8_81 = arith.constant 8 : index
    %c56_82 = arith.constant 56 : index
    %113 = vector.load %arg9[%c0_80, %c8_81, %c56_82] : memref<1x12x64xbf16, #tpu.memory_space<vmem>>, vector<1x4x8xbf16>
    tpu.vector_store %arg9[%c0_80, %c8_81, %c56_82], %112 {strides = array<i32>} : memref<1x12x64xbf16, #tpu.memory_space<vmem>>, vector<1x4x8xbf16>,
    %c0_83 = arith.constant 0 : index
    %c0_84 = arith.constant 0 : index
    %c0_85 = arith.constant 0 : index
    %114 = vector.load %arg9[%c0_83, %c0_84, %c0_85] : memref<1x12x64xbf16, #tpu.memory_space<vmem>>, vector<1x12x64xbf16>
    %115 = vector.shape_cast %114 : vector<1x12x64xbf16> to vector<12x64xbf16>
    %c0_86 = arith.constant 0 : index
    %c0_87 = arith.constant 0 : index
    %116 = vector.load %arg4[%c0_86, %c0_87] : memref<13x12xbf16, #tpu.memory_space<vmem>>, vector<13x12xbf16>
    %cst_88 = arith.constant dense<0.000000e+00> : vector<13x64xf32>
    %117 = tpu.matmul %116, %115, %cst_88 {dimension_numbers = #tpu.dot_dimension_numbers<[1], [0], [0], [1], [0, 0, 1, 1], [], []>} : vector<13x12xbf16>, vector<12x64xbf16>, vector<13x64xf32> -> vector<13x64xf32>
    %c0_89 = arith.constant 0 : index
    %c0_90 = arith.constant 0 : index
    %118 = vector.load %arg5[%c0_89, %c0_90] : memref<13x1xf32, #tpu.memory_space<vmem>>, vector<13x1xf32>
    %119 = vector.broadcast %118 : vector<13x1xf32> to vector<13x64xf32>
    %120 = arith.addf %117, %119 : vector<13x64xf32>
    %121 = vector.extract_strided_slice %120 {offsets = [0, 0], sizes = [4, 64], strides = [1, 1]} : vector<13x64xf32> to vector<4x64xf32>
    %122 = arith.truncf %121 : vector<4x64xf32> to vector<4x64xbf16>
    %123 = vector.extract_strided_slice %120 {offsets = [4, 0], sizes = [4, 64], strides = [1, 1]} : vector<13x64xf32> to vector<4x64xf32>
    %124 = arith.truncf %123 : vector<4x64xf32> to vector<4x64xbf16>
    %125 = vector.extract_strided_slice %120 {offsets = [8, 0], sizes = [5, 64], strides = [1, 1]} : vector<13x64xf32> to vector<5x64xf32>
    %126 = arith.truncf %125 : vector<5x64xf32> to vector<5x64xbf16>
    %cst_91 = arith.constant dense<0.000000e+00> : vector<64x64xf32>
    %127 = tpu.matmul %122, %124, %cst_91 {dimension_numbers = #tpu.dot_dimension_numbers<[0], [0], [1], [1], [0, 1, 1, 1], [], []>} : vector<4x64xbf16>, vector<4x64xbf16>, vector<64x64xf32> -> vector<64x64xf32>
    %cst_92 = arith.constant dense<0xFF800000> : vector<64xf32>
    %128 = vector.multi_reduction <maximumf>, %127, %cst_92 [1] : vector<64x64xf32> to vector<64xf32>
    %129 = vector.shape_cast %128 : vector<64xf32> to vector<64x1xf32>
    %130 = vector.broadcast %129 : vector<64x1xf32> to vector<64x64xf32>
    %131 = arith.subf %127, %130 : vector<64x64xf32>
    %132 = math.exp %131 : vector<64x64xf32>
    %133 = arith.truncf %132 : vector<64x64xf32> to vector<64x64xbf16>
    %cst_93 = arith.constant dense<0.000000e+00> : vector<5x64xf32>
    %134 = tpu.matmul %126, %133, %cst_93 {dimension_numbers = #tpu.dot_dimension_numbers<[1], [1], [0], [0], [0, 0, 1, 0], [], []>} : vector<5x64xbf16>, vector<64x64xbf16>, vector<5x64xf32> -> vector<5x64xf32>
    %135 = vector.extract_strided_slice %134 {offsets = [4, 0], sizes = [1, 64], strides = [1, 1]} : vector<5x64xf32> to vector<1x64xf32>
    %136 = tpu.reciprocal %135 {approx = true} : vector<1x64xf32> -> vector<1x64xf32>
    %137 = vector.extract_strided_slice %134 {offsets = [0, 0], sizes = [4, 64], strides = [1, 1]} : vector<5x64xf32> to vector<4x64xf32>
    %138 = vector.broadcast %136 : vector<1x64xf32> to vector<4x64xf32>
    %139 = arith.mulf %137, %138 : vector<4x64xf32>
    %140 = vector.extract_strided_slice %139 {offsets = [0, 0], sizes = [4, 8], strides = [1, 1]} : vector<4x64xf32> to vector<4x8xf32>
    %141 = vector.extract_strided_slice %139 {offsets = [0, 0], sizes = [4, 8], strides = [1, 1]} : vector<4x64xf32> to vector<4x8xf32>
    %142 = vector.extract_strided_slice %139 {offsets = [0, 8], sizes = [4, 8], strides = [1, 1]} : vector<4x64xf32> to vector<4x8xf32>
    %cst_94 = arith.constant 2.500000e-01 : f32
    %143 = vector.broadcast %cst_94 : f32 to vector<4x8xf32>
    %144 = arith.mulf %143, %141 : vector<4x8xf32>
    %cst_95 = arith.constant 7.500000e-01 : f32
    %145 = vector.broadcast %cst_95 : f32 to vector<4x8xf32>
    %146 = arith.mulf %145, %140 : vector<4x8xf32>
    %147 = arith.addf %144, %146 : vector<4x8xf32>
    %148 = arith.truncf %147 : vector<4x8xf32> to vector<4x8xbf16>
    %c0_96 = arith.constant 0 : index
    %c0_97 = arith.constant 0 : index
    %c0_98 = arith.constant 0 : index
    %c0_99 = arith.constant 0 : index
    %149 = vector.load %arg10[%c0_96, %c0_97, %c0_98, %c0_99] : memref<1x4x8x16xbf16, #tpu.memory_space<vmem>>, vector<1x4x1x8xbf16>
    %150 = vector.shape_cast %149 : vector<1x4x1x8xbf16> to vector<4x8xbf16>
    %151 = vector.shape_cast %148 : vector<4x8xbf16> to vector<1x4x1x8xbf16>
    tpu.vector_store %arg10[%c0_96, %c0_97, %c0_98, %c0_99], %151 {strides = array<i32>} : memref<1x4x8x16xbf16, #tpu.memory_space<vmem>>, vector<1x4x1x8xbf16>,
    %cst_100 = arith.constant 7.500000e-01 : f32
    %152 = vector.broadcast %cst_100 : f32 to vector<4x8xf32>
    %153 = arith.mulf %152, %140 : vector<4x8xf32>
    %cst_101 = arith.constant 2.500000e-01 : f32
    %154 = vector.broadcast %cst_101 : f32 to vector<4x8xf32>
    %155 = arith.mulf %154, %142 : vector<4x8xf32>
    %156 = arith.addf %153, %155 : vector<4x8xf32>
    %157 = arith.truncf %156 : vector<4x8xf32> to vector<4x8xbf16>
    %c0_102 = arith.constant 0 : index
    %c0_103 = arith.constant 0 : index
    %c0_104 = arith.constant 0 : index
    %c8_105 = arith.constant 8 : index
    %158 = vector.load %arg10[%c0_102, %c0_103, %c0_104, %c8_105] : memref<1x4x8x16xbf16, #tpu.memory_space<vmem>>, vector<1x4x1x8xbf16>
    %159 = vector.shape_cast %158 : vector<1x4x1x8xbf16> to vector<4x8xbf16>
    %160 = vector.shape_cast %157 : vector<4x8xbf16> to vector<1x4x1x8xbf16>
    tpu.vector_store %arg10[%c0_102, %c0_103, %c0_104, %c8_105], %160 {strides = array<i32>} : memref<1x4x8x16xbf16, #tpu.memory_space<vmem>>, vector<1x4x1x8xbf16>,
    %161 = vector.extract_strided_slice %139 {offsets = [0, 8], sizes = [4, 8], strides = [1, 1]} : vector<4x64xf32> to vector<4x8xf32>
    %162 = vector.extract_strided_slice %139 {offsets = [0, 0], sizes = [4, 8], strides = [1, 1]} : vector<4x64xf32> to vector<4x8xf32>
    %163 = vector.extract_strided_slice %139 {offsets = [0, 16], sizes = [4, 8], strides = [1, 1]} : vector<4x64xf32> to vector<4x8xf32>
    %cst_106 = arith.constant 2.500000e-01 : f32
    %164 = vector.broadcast %cst_106 : f32 to vector<4x8xf32>
    %165 = arith.mulf %164, %162 : vector<4x8xf32>
    %cst_107 = arith.constant 7.500000e-01 : f32
    %166 = vector.broadcast %cst_107 : f32 to vector<4x8xf32>
    %167 = arith.mulf %166, %161 : vector<4x8xf32>
    %168 = arith.addf %165, %167 : vector<4x8xf32>
    %169 = arith.truncf %168 : vector<4x8xf32> to vector<4x8xbf16>
    %c0_108 = arith.constant 0 : index
    %c0_109 = arith.constant 0 : index
    %c1 = arith.constant 1 : index
    %c0_110 = arith.constant 0 : index
    %170 = vector.load %arg10[%c0_108, %c0_109, %c1, %c0_110] : memref<1x4x8x16xbf16, #tpu.memory_space<vmem>>, vector<1x4x1x8xbf16>
    %171 = vector.shape_cast %170 : vector<1x4x1x8xbf16> to vector<4x8xbf16>
    %172 = vector.shape_cast %169 : vector<4x8xbf16> to vector<1x4x1x8xbf16>
    tpu.vector_store %arg10[%c0_108, %c0_109, %c1, %c0_110], %172 {strides = array<i32>} : memref<1x4x8x16xbf16, #tpu.memory_space<vmem>>, vector<1x4x1x8xbf16>,
    %cst_111 = arith.constant 7.500000e-01 : f32
    %173 = vector.broadcast %cst_111 : f32 to vector<4x8xf32>
    %174 = arith.mulf %173, %161 : vector<4x8xf32>
    %cst_112 = arith.constant 2.500000e-01 : f32
    %175 = vector.broadcast %cst_112 : f32 to vector<4x8xf32>
    %176 = arith.mulf %175, %163 : vector<4x8xf32>
    %177 = arith.addf %174, %176 : vector<4x8xf32>
    %178 = arith.truncf %177 : vector<4x8xf32> to vector<4x8xbf16>
    %c0_113 = arith.constant 0 : index
    %c0_114 = arith.constant 0 : index
    %c1_115 = arith.constant 1 : index
    %c8_116 = arith.constant 8 : index
    %179 = vector.load %arg10[%c0_113, %c0_114, %c1_115, %c8_116] : memref<1x4x8x16xbf16, #tpu.memory_space<vmem>>, vector<1x4x1x8xbf16>
    %180 = vector.shape_cast %179 : vector<1x4x1x8xbf16> to vector<4x8xbf16>
    %181 = vector.shape_cast %178 : vector<4x8xbf16> to vector<1x4x1x8xbf16>
    tpu.vector_store %arg10[%c0_113, %c0_114, %c1_115, %c8_116], %181 {strides = array<i32>} : memref<1x4x8x16xbf16, #tpu.memory_space<vmem>>, vector<1x4x1x8xbf16>,
    %182 = vector.extract_strided_slice %139 {offsets = [0, 16], sizes = [4, 8], strides = [1, 1]} : vector<4x64xf32> to vector<4x8xf32>
    %183 = vector.extract_strided_slice %139 {offsets = [0, 8], sizes = [4, 8], strides = [1, 1]} : vector<4x64xf32> to vector<4x8xf32>
    %184 = vector.extract_strided_slice %139 {offsets = [0, 24], sizes = [4, 8], strides = [1, 1]} : vector<4x64xf32> to vector<4x8xf32>
    %cst_117 = arith.constant 2.500000e-01 : f32
    %185 = vector.broadcast %cst_117 : f32 to vector<4x8xf32>
    %186 = arith.mulf %185, %183 : vector<4x8xf32>
    %cst_118 = arith.constant 7.500000e-01 : f32
    %187 = vector.broadcast %cst_118 : f32 to vector<4x8xf32>
    %188 = arith.mulf %187, %182 : vector<4x8xf32>
    %189 = arith.addf %186, %188 : vector<4x8xf32>
    %190 = arith.truncf %189 : vector<4x8xf32> to vector<4x8xbf16>
    %c0_119 = arith.constant 0 : index
    %c0_120 = arith.constant 0 : index
    %c2 = arith.constant 2 : index
    %c0_121 = arith.constant 0 : index
    %191 = vector.load %arg10[%c0_119, %c0_120, %c2, %c0_121] : memref<1x4x8x16xbf16, #tpu.memory_space<vmem>>, vector<1x4x1x8xbf16>
    %192 = vector.shape_cast %191 : vector<1x4x1x8xbf16> to vector<4x8xbf16>
    %193 = vector.shape_cast %190 : vector<4x8xbf16> to vector<1x4x1x8xbf16>
    tpu.vector_store %arg10[%c0_119, %c0_120, %c2, %c0_121], %193 {strides = array<i32>} : memref<1x4x8x16xbf16, #tpu.memory_space<vmem>>, vector<1x4x1x8xbf16>,
    %cst_122 = arith.constant 7.500000e-01 : f32
    %194 = vector.broadcast %cst_122 : f32 to vector<4x8xf32>
    %195 = arith.mulf %194, %182 : vector<4x8xf32>
    %cst_123 = arith.constant 2.500000e-01 : f32
    %196 = vector.broadcast %cst_123 : f32 to vector<4x8xf32>
    %197 = arith.mulf %196, %184 : vector<4x8xf32>
    %198 = arith.addf %195, %197 : vector<4x8xf32>
    %199 = arith.truncf %198 : vector<4x8xf32> to vector<4x8xbf16>
    %c0_124 = arith.constant 0 : index
    %c0_125 = arith.constant 0 : index
    %c2_126 = arith.constant 2 : index
    %c8_127 = arith.constant 8 : index
    %200 = vector.load %arg10[%c0_124, %c0_125, %c2_126, %c8_127] : memref<1x4x8x16xbf16, #tpu.memory_space<vmem>>, vector<1x4x1x8xbf16>
    %201 = vector.shape_cast %200 : vector<1x4x1x8xbf16> to vector<4x8xbf16>
    %202 = vector.shape_cast %199 : vector<4x8xbf16> to vector<1x4x1x8xbf16>
    tpu.vector_store %arg10[%c0_124, %c0_125, %c2_126, %c8_127], %202 {strides = array<i32>} : memref<1x4x8x16xbf16, #tpu.memory_space<vmem>>, vector<1x4x1x8xbf16>,
    %203 = vector.extract_strided_slice %139 {offsets = [0, 24], sizes = [4, 8], strides = [1, 1]} : vector<4x64xf32> to vector<4x8xf32>
    %204 = vector.extract_strided_slice %139 {offsets = [0, 16], sizes = [4, 8], strides = [1, 1]} : vector<4x64xf32> to vector<4x8xf32>
    %205 = vector.extract_strided_slice %139 {offsets = [0, 32], sizes = [4, 8], strides = [1, 1]} : vector<4x64xf32> to vector<4x8xf32>
    %cst_128 = arith.constant 2.500000e-01 : f32
    %206 = vector.broadcast %cst_128 : f32 to vector<4x8xf32>
    %207 = arith.mulf %206, %204 : vector<4x8xf32>
    %cst_129 = arith.constant 7.500000e-01 : f32
    %208 = vector.broadcast %cst_129 : f32 to vector<4x8xf32>
    %209 = arith.mulf %208, %203 : vector<4x8xf32>
    %210 = arith.addf %207, %209 : vector<4x8xf32>
    %211 = arith.truncf %210 : vector<4x8xf32> to vector<4x8xbf16>
    %c0_130 = arith.constant 0 : index
    %c0_131 = arith.constant 0 : index
    %c3 = arith.constant 3 : index
    %c0_132 = arith.constant 0 : index
    %212 = vector.load %arg10[%c0_130, %c0_131, %c3, %c0_132] : memref<1x4x8x16xbf16, #tpu.memory_space<vmem>>, vector<1x4x1x8xbf16>
    %213 = vector.shape_cast %212 : vector<1x4x1x8xbf16> to vector<4x8xbf16>
    %214 = vector.shape_cast %211 : vector<4x8xbf16> to vector<1x4x1x8xbf16>
    tpu.vector_store %arg10[%c0_130, %c0_131, %c3, %c0_132], %214 {strides = array<i32>} : memref<1x4x8x16xbf16, #tpu.memory_space<vmem>>, vector<1x4x1x8xbf16>,
    %cst_133 = arith.constant 7.500000e-01 : f32
    %215 = vector.broadcast %cst_133 : f32 to vector<4x8xf32>
    %216 = arith.mulf %215, %203 : vector<4x8xf32>
    %cst_134 = arith.constant 2.500000e-01 : f32
    %217 = vector.broadcast %cst_134 : f32 to vector<4x8xf32>
    %218 = arith.mulf %217, %205 : vector<4x8xf32>
    %219 = arith.addf %216, %218 : vector<4x8xf32>
    %220 = arith.truncf %219 : vector<4x8xf32> to vector<4x8xbf16>
    %c0_135 = arith.constant 0 : index
    %c0_136 = arith.constant 0 : index
    %c3_137 = arith.constant 3 : index
    %c8_138 = arith.constant 8 : index
    %221 = vector.load %arg10[%c0_135, %c0_136, %c3_137, %c8_138] : memref<1x4x8x16xbf16, #tpu.memory_space<vmem>>, vector<1x4x1x8xbf16>
    %222 = vector.shape_cast %221 : vector<1x4x1x8xbf16> to vector<4x8xbf16>
    %223 = vector.shape_cast %220 : vector<4x8xbf16> to vector<1x4x1x8xbf16>
    tpu.vector_store %arg10[%c0_135, %c0_136, %c3_137, %c8_138], %223 {strides = array<i32>} : memref<1x4x8x16xbf16, #tpu.memory_space<vmem>>, vector<1x4x1x8xbf16>,
    %224 = vector.extract_strided_slice %139 {offsets = [0, 32], sizes = [4, 8], strides = [1, 1]} : vector<4x64xf32> to vector<4x8xf32>
    %225 = vector.extract_strided_slice %139 {offsets = [0, 24], sizes = [4, 8], strides = [1, 1]} : vector<4x64xf32> to vector<4x8xf32>
    %226 = vector.extract_strided_slice %139 {offsets = [0, 40], sizes = [4, 8], strides = [1, 1]} : vector<4x64xf32> to vector<4x8xf32>
    %cst_139 = arith.constant 2.500000e-01 : f32
    %227 = vector.broadcast %cst_139 : f32 to vector<4x8xf32>
    %228 = arith.mulf %227, %225 : vector<4x8xf32>
    %cst_140 = arith.constant 7.500000e-01 : f32
    %229 = vector.broadcast %cst_140 : f32 to vector<4x8xf32>
    %230 = arith.mulf %229, %224 : vector<4x8xf32>
    %231 = arith.addf %228, %230 : vector<4x8xf32>
    %232 = arith.truncf %231 : vector<4x8xf32> to vector<4x8xbf16>
    %c0_141 = arith.constant 0 : index
    %c0_142 = arith.constant 0 : index
    %c4_143 = arith.constant 4 : index
    %c0_144 = arith.constant 0 : index
    %233 = vector.load %arg10[%c0_141, %c0_142, %c4_143, %c0_144] : memref<1x4x8x16xbf16, #tpu.memory_space<vmem>>, vector<1x4x1x8xbf16>
    %234 = vector.shape_cast %233 : vector<1x4x1x8xbf16> to vector<4x8xbf16>
    %235 = vector.shape_cast %232 : vector<4x8xbf16> to vector<1x4x1x8xbf16>
    tpu.vector_store %arg10[%c0_141, %c0_142, %c4_143, %c0_144], %235 {strides = array<i32>} : memref<1x4x8x16xbf16, #tpu.memory_space<vmem>>, vector<1x4x1x8xbf16>,
    %cst_145 = arith.constant 7.500000e-01 : f32
    %236 = vector.broadcast %cst_145 : f32 to vector<4x8xf32>
    %237 = arith.mulf %236, %224 : vector<4x8xf32>
    %cst_146 = arith.constant 2.500000e-01 : f32
    %238 = vector.broadcast %cst_146 : f32 to vector<4x8xf32>
    %239 = arith.mulf %238, %226 : vector<4x8xf32>
    %240 = arith.addf %237, %239 : vector<4x8xf32>
    %241 = arith.truncf %240 : vector<4x8xf32> to vector<4x8xbf16>
    %c0_147 = arith.constant 0 : index
    %c0_148 = arith.constant 0 : index
    %c4_149 = arith.constant 4 : index
    %c8_150 = arith.constant 8 : index
    %242 = vector.load %arg10[%c0_147, %c0_148, %c4_149, %c8_150] : memref<1x4x8x16xbf16, #tpu.memory_space<vmem>>, vector<1x4x1x8xbf16>
    %243 = vector.shape_cast %242 : vector<1x4x1x8xbf16> to vector<4x8xbf16>
    %244 = vector.shape_cast %241 : vector<4x8xbf16> to vector<1x4x1x8xbf16>
    tpu.vector_store %arg10[%c0_147, %c0_148, %c4_149, %c8_150], %244 {strides = array<i32>} : memref<1x4x8x16xbf16, #tpu.memory_space<vmem>>, vector<1x4x1x8xbf16>,
    %245 = vector.extract_strided_slice %139 {offsets = [0, 40], sizes = [4, 8], strides = [1, 1]} : vector<4x64xf32> to vector<4x8xf32>
    %246 = vector.extract_strided_slice %139 {offsets = [0, 32], sizes = [4, 8], strides = [1, 1]} : vector<4x64xf32> to vector<4x8xf32>
    %247 = vector.extract_strided_slice %139 {offsets = [0, 48], sizes = [4, 8], strides = [1, 1]} : vector<4x64xf32> to vector<4x8xf32>
    %cst_151 = arith.constant 2.500000e-01 : f32
    %248 = vector.broadcast %cst_151 : f32 to vector<4x8xf32>
    %249 = arith.mulf %248, %246 : vector<4x8xf32>
    %cst_152 = arith.constant 7.500000e-01 : f32
    %250 = vector.broadcast %cst_152 : f32 to vector<4x8xf32>
    %251 = arith.mulf %250, %245 : vector<4x8xf32>
    %252 = arith.addf %249, %251 : vector<4x8xf32>
    %253 = arith.truncf %252 : vector<4x8xf32> to vector<4x8xbf16>
    %c0_153 = arith.constant 0 : index
    %c0_154 = arith.constant 0 : index
    %c5 = arith.constant 5 : index
    %c0_155 = arith.constant 0 : index
    %254 = vector.load %arg10[%c0_153, %c0_154, %c5, %c0_155] : memref<1x4x8x16xbf16, #tpu.memory_space<vmem>>, vector<1x4x1x8xbf16>
    %255 = vector.shape_cast %254 : vector<1x4x1x8xbf16> to vector<4x8xbf16>
    %256 = vector.shape_cast %253 : vector<4x8xbf16> to vector<1x4x1x8xbf16>
    tpu.vector_store %arg10[%c0_153, %c0_154, %c5, %c0_155], %256 {strides = array<i32>} : memref<1x4x8x16xbf16, #tpu.memory_space<vmem>>, vector<1x4x1x8xbf16>,
    %cst_156 = arith.constant 7.500000e-01 : f32
    %257 = vector.broadcast %cst_156 : f32 to vector<4x8xf32>
    %258 = arith.mulf %257, %245 : vector<4x8xf32>
    %cst_157 = arith.constant 2.500000e-01 : f32
    %259 = vector.broadcast %cst_157 : f32 to vector<4x8xf32>
    %260 = arith.mulf %259, %247 : vector<4x8xf32>
    %261 = arith.addf %258, %260 : vector<4x8xf32>
    %262 = arith.truncf %261 : vector<4x8xf32> to vector<4x8xbf16>
    %c0_158 = arith.constant 0 : index
    %c0_159 = arith.constant 0 : index
    %c5_160 = arith.constant 5 : index
    %c8_161 = arith.constant 8 : index
    %263 = vector.load %arg10[%c0_158, %c0_159, %c5_160, %c8_161] : memref<1x4x8x16xbf16, #tpu.memory_space<vmem>>, vector<1x4x1x8xbf16>
    %264 = vector.shape_cast %263 : vector<1x4x1x8xbf16> to vector<4x8xbf16>
    %265 = vector.shape_cast %262 : vector<4x8xbf16> to vector<1x4x1x8xbf16>
    tpu.vector_store %arg10[%c0_158, %c0_159, %c5_160, %c8_161], %265 {strides = array<i32>} : memref<1x4x8x16xbf16, #tpu.memory_space<vmem>>, vector<1x4x1x8xbf16>,
    %266 = vector.extract_strided_slice %139 {offsets = [0, 48], sizes = [4, 8], strides = [1, 1]} : vector<4x64xf32> to vector<4x8xf32>
    %267 = vector.extract_strided_slice %139 {offsets = [0, 40], sizes = [4, 8], strides = [1, 1]} : vector<4x64xf32> to vector<4x8xf32>
    %268 = vector.extract_strided_slice %139 {offsets = [0, 56], sizes = [4, 8], strides = [1, 1]} : vector<4x64xf32> to vector<4x8xf32>
    %cst_162 = arith.constant 2.500000e-01 : f32
    %269 = vector.broadcast %cst_162 : f32 to vector<4x8xf32>
    %270 = arith.mulf %269, %267 : vector<4x8xf32>
    %cst_163 = arith.constant 7.500000e-01 : f32
    %271 = vector.broadcast %cst_163 : f32 to vector<4x8xf32>
    %272 = arith.mulf %271, %266 : vector<4x8xf32>
    %273 = arith.addf %270, %272 : vector<4x8xf32>
    %274 = arith.truncf %273 : vector<4x8xf32> to vector<4x8xbf16>
    %c0_164 = arith.constant 0 : index
    %c0_165 = arith.constant 0 : index
    %c6 = arith.constant 6 : index
    %c0_166 = arith.constant 0 : index
    %275 = vector.load %arg10[%c0_164, %c0_165, %c6, %c0_166] : memref<1x4x8x16xbf16, #tpu.memory_space<vmem>>, vector<1x4x1x8xbf16>
    %276 = vector.shape_cast %275 : vector<1x4x1x8xbf16> to vector<4x8xbf16>
    %277 = vector.shape_cast %274 : vector<4x8xbf16> to vector<1x4x1x8xbf16>
    tpu.vector_store %arg10[%c0_164, %c0_165, %c6, %c0_166], %277 {strides = array<i32>} : memref<1x4x8x16xbf16, #tpu.memory_space<vmem>>, vector<1x4x1x8xbf16>,
    %cst_167 = arith.constant 7.500000e-01 : f32
    %278 = vector.broadcast %cst_167 : f32 to vector<4x8xf32>
    %279 = arith.mulf %278, %266 : vector<4x8xf32>
    %cst_168 = arith.constant 2.500000e-01 : f32
    %280 = vector.broadcast %cst_168 : f32 to vector<4x8xf32>
    %281 = arith.mulf %280, %268 : vector<4x8xf32>
    %282 = arith.addf %279, %281 : vector<4x8xf32>
    %283 = arith.truncf %282 : vector<4x8xf32> to vector<4x8xbf16>
    %c0_169 = arith.constant 0 : index
    %c0_170 = arith.constant 0 : index
    %c6_171 = arith.constant 6 : index
    %c8_172 = arith.constant 8 : index
    %284 = vector.load %arg10[%c0_169, %c0_170, %c6_171, %c8_172] : memref<1x4x8x16xbf16, #tpu.memory_space<vmem>>, vector<1x4x1x8xbf16>
    %285 = vector.shape_cast %284 : vector<1x4x1x8xbf16> to vector<4x8xbf16>
    %286 = vector.shape_cast %283 : vector<4x8xbf16> to vector<1x4x1x8xbf16>
    tpu.vector_store %arg10[%c0_169, %c0_170, %c6_171, %c8_172], %286 {strides = array<i32>} : memref<1x4x8x16xbf16, #tpu.memory_space<vmem>>, vector<1x4x1x8xbf16>,
    %287 = vector.extract_strided_slice %139 {offsets = [0, 56], sizes = [4, 8], strides = [1, 1]} : vector<4x64xf32> to vector<4x8xf32>
    %288 = vector.extract_strided_slice %139 {offsets = [0, 48], sizes = [4, 8], strides = [1, 1]} : vector<4x64xf32> to vector<4x8xf32>
    %289 = vector.extract_strided_slice %139 {offsets = [0, 56], sizes = [4, 8], strides = [1, 1]} : vector<4x64xf32> to vector<4x8xf32>
    %cst_173 = arith.constant 2.500000e-01 : f32
    %290 = vector.broadcast %cst_173 : f32 to vector<4x8xf32>
    %291 = arith.mulf %290, %288 : vector<4x8xf32>
    %cst_174 = arith.constant 7.500000e-01 : f32
    %292 = vector.broadcast %cst_174 : f32 to vector<4x8xf32>
    %293 = arith.mulf %292, %287 : vector<4x8xf32>
    %294 = arith.addf %291, %293 : vector<4x8xf32>
    %295 = arith.truncf %294 : vector<4x8xf32> to vector<4x8xbf16>
    %c0_175 = arith.constant 0 : index
    %c0_176 = arith.constant 0 : index
    %c7 = arith.constant 7 : index
    %c0_177 = arith.constant 0 : index
    %296 = vector.load %arg10[%c0_175, %c0_176, %c7, %c0_177] : memref<1x4x8x16xbf16, #tpu.memory_space<vmem>>, vector<1x4x1x8xbf16>
    %297 = vector.shape_cast %296 : vector<1x4x1x8xbf16> to vector<4x8xbf16>
    %298 = vector.shape_cast %295 : vector<4x8xbf16> to vector<1x4x1x8xbf16>
    tpu.vector_store %arg10[%c0_175, %c0_176, %c7, %c0_177], %298 {strides = array<i32>} : memref<1x4x8x16xbf16, #tpu.memory_space<vmem>>, vector<1x4x1x8xbf16>,
    %cst_178 = arith.constant 7.500000e-01 : f32
    %299 = vector.broadcast %cst_178 : f32 to vector<4x8xf32>
    %300 = arith.mulf %299, %287 : vector<4x8xf32>
    %cst_179 = arith.constant 2.500000e-01 : f32
    %301 = vector.broadcast %cst_179 : f32 to vector<4x8xf32>
    %302 = arith.mulf %301, %289 : vector<4x8xf32>
    %303 = arith.addf %300, %302 : vector<4x8xf32>
    %304 = arith.truncf %303 : vector<4x8xf32> to vector<4x8xbf16>
    %c0_180 = arith.constant 0 : index
    %c0_181 = arith.constant 0 : index
    %c7_182 = arith.constant 7 : index
    %c8_183 = arith.constant 8 : index
    %305 = vector.load %arg10[%c0_180, %c0_181, %c7_182, %c8_183] : memref<1x4x8x16xbf16, #tpu.memory_space<vmem>>, vector<1x4x1x8xbf16>
    %306 = vector.shape_cast %305 : vector<1x4x1x8xbf16> to vector<4x8xbf16>
    %307 = vector.shape_cast %304 : vector<4x8xbf16> to vector<1x4x1x8xbf16>
    tpu.vector_store %arg10[%c0_180, %c0_181, %c7_182, %c8_183], %307 {strides = array<i32>} : memref<1x4x8x16xbf16, #tpu.memory_space<vmem>>, vector<1x4x1x8xbf16>,
    %c0_184 = arith.constant 0 : index
    %c0_185 = arith.constant 0 : index
    %c0_186 = arith.constant 0 : index
    %c0_187 = arith.constant 0 : index
    %308 = vector.load %arg10[%c0_184, %c0_185, %c0_186, %c0_187] : memref<1x4x8x16xbf16, #tpu.memory_space<vmem>>, vector<1x4x8x16xbf16>
    %309 = vector.shape_cast %308 : vector<1x4x8x16xbf16> to vector<32x16xbf16>
    %c0_188 = arith.constant 0 : index
    %c0_189 = arith.constant 0 : index
    %310 = vector.load %arg7[%c0_188, %c0_189] : memref<16x32xbf16, #tpu.memory_space<vmem>>, vector<16x32xbf16>
    %cst_190 = arith.constant dense<0.000000e+00> : vector<32x32xf32>
    %311 = tpu.matmul %309, %310, %cst_190 {dimension_numbers = #tpu.dot_dimension_numbers<[1], [0], [0], [1], [0, 0, 1, 1], [], []>} : vector<32x16xbf16>, vector<16x32xbf16>, vector<32x32xf32> -> vector<32x32xf32>
    %c0_191 = arith.constant 0 : index
    %c0_192 = arith.constant 0 : index
    %c0_193 = arith.constant 0 : index
    %c0_194 = arith.constant 0 : index
    %312 = vector.load %arg1[%c0_191, %c0_192, %c0_193, %c0_194] : memref<1x4x8x32xf32, #tpu.memory_space<vmem>>, vector<1x4x8x32xf32>
    %c0_195 = arith.constant 0 : index
    %c0_196 = arith.constant 0 : index
    %c0_197 = arith.constant 0 : index
    %c0_198 = arith.constant 0 : index
    %313 = vector.load %arg2[%c0_195, %c0_196, %c0_197, %c0_198] : memref<1x4x8x32xf32, #tpu.memory_space<vmem>>, vector<1x4x8x32xf32>
    %314 = arith.addf %312, %313 : vector<1x4x8x32xf32>
    %c0_199 = arith.constant 0 : index
    %c0_200 = arith.constant 0 : index
    %c0_201 = arith.constant 0 : index
    %c0_202 = arith.constant 0 : index
    %315 = vector.load %arg3[%c0_199, %c0_200, %c0_201, %c0_202] : memref<1x4x8x32xf32, #tpu.memory_space<vmem>>, vector<1x4x8x32xf32>
    %316 = arith.addf %314, %315 : vector<1x4x8x32xf32>
    %317 = vector.shape_cast %311 : vector<32x32xf32> to vector<1x4x8x32xf32>
    %318 = arith.addf %317, %316 : vector<1x4x8x32xf32>
    %c0_203 = arith.constant 0 : index
    %c0_204 = arith.constant 0 : index
    %c0_205 = arith.constant 0 : index
    %c0_206 = arith.constant 0 : index
    %319 = vector.load %arg8[%c0_203, %c0_204, %c0_205, %c0_206] : memref<1x4x8x32xf32, #tpu.memory_space<vmem>>, vector<1x4x8x32xf32>
    tpu.vector_store %arg8[%c0_203, %c0_204, %c0_205, %c0_206], %318 {strides = array<i32>} : memref<1x4x8x32xf32, #tpu.memory_space<vmem>>, vector<1x4x8x32xf32>,
    return
  }
  func.func @transform_0(%arg0: i32) -> (i32, i32, i32, i32) {
    %c0_i32 = arith.constant 0 : i32
    %c0_i32_0 = arith.constant 0 : i32
    %c0_i32_1 = arith.constant 0 : i32
    %c0_i32_2 = arith.constant 0 : i32
    return %arg0, %c0_i32, %c0_i32_0, %c0_i32_1 : i32, i32, i32, i32
  }
  func.func @transform_1(%arg0: i32) -> (i32, i32, i32, i32) {
    %c0_i32 = arith.constant 0 : i32
    %c0_i32_0 = arith.constant 0 : i32
    %c0_i32_1 = arith.constant 0 : i32
    %c0_i32_2 = arith.constant 0 : i32
    return %arg0, %c0_i32, %c0_i32_0, %c0_i32_1 : i32, i32, i32, i32
  }
  func.func @transform_2(%arg0: i32) -> (i32, i32, i32, i32) {
    %c0_i32 = arith.constant 0 : i32
    %c0_i32_0 = arith.constant 0 : i32
    %c0_i32_1 = arith.constant 0 : i32
    %c0_i32_2 = arith.constant 0 : i32
    return %arg0, %c0_i32, %c0_i32_0, %c0_i32_1 : i32, i32, i32, i32
  }
  func.func @transform_3(%arg0: i32) -> (i32, i32) {
    %c0_i32 = arith.constant 0 : i32
    %c0_i32_0 = arith.constant 0 : i32
    %c0_i32_1 = arith.constant 0 : i32
    return %c0_i32, %c0_i32_0 : i32, i32
  }
  func.func @transform_4(%arg0: i32) -> (i32, i32) {
    %c0_i32 = arith.constant 0 : i32
    %c0_i32_0 = arith.constant 0 : i32
    %c0_i32_1 = arith.constant 0 : i32
    return %c0_i32, %c0_i32_0 : i32, i32
  }
  func.func @transform_5(%arg0: i32) -> (i32, i32) {
    %c0_i32 = arith.constant 0 : i32
    %c0_i32_0 = arith.constant 0 : i32
    %c0_i32_1 = arith.constant 0 : i32
    return %c0_i32, %c0_i32_0 : i32, i32
  }
  func.func @transform_6(%arg0: i32) -> (i32, i32) {
    %c0_i32 = arith.constant 0 : i32
    %c0_i32_0 = arith.constant 0 : i32
    %c0_i32_1 = arith.constant 0 : i32
    return %c0_i32, %c0_i32_0 : i32, i32
  }
  func.func @transform_7(%arg0: i32) -> (i32, i32, i32, i32) {
    %c0_i32 = arith.constant 0 : i32
    %c0_i32_0 = arith.constant 0 : i32
    %c0_i32_1 = arith.constant 0 : i32
    %c0_i32_2 = arith.constant 0 : i32
    return %arg0, %c0_i32, %c0_i32_0, %c0_i32_1 : i32, i32, i32, i32
  }
}

</mosaic_0001>

<bundles_post_ra>
// kernel: tpu_custom_call.1
= control target key start
LH: loop header
LB: loop body
LE: loop exit
PB: predicated region body
PF: predicated region fallthrough
CT: control target
= control target key end

     0   :  { %s3550_s0 = inlined_call_operand.hbm [shape: f32[2,4,8,32], index: 0, kind: input, shape index: {}]   ;;  %s3551_s1 = inlined_call_operand.hbm [shape: f32[2,4,8,32], index: 1, kind: input, shape index: {}]   ;;  %s3552_s2 = inlined_call_operand.hbm [shape: f32[2,4,8,32], index: 2, kind: input, shape index: {}]   ;;  %s3553_s3 = inlined_call_operand.vmem [shape: bf16[13,12], index: 3, kind: input, shape index: {}]   ;;  %s3554_s4 = inlined_call_operand.vmem [shape: f32[13,1], index: 4, kind: input, shape index: {}]   ;;  %s3555_s5 = inlined_call_operand.vmem [shape: bf16[32,8], index: 5, kind: input, shape index: {}]   ;;  %s3556_s6 = inlined_call_operand.vmem [shape: bf16[16,32], index: 6, kind: input, shape index: {}]   ;;  %s3557_s7 = inlined_call_operand.hbm [shape: f32[2,4,8,32], index: 7, kind: output, shape index: {}]  }
   0x1   :  { %3581 = sst [smem:[#allocation17_spill]] %s3550_s0 }
   0x2   :  { %3582 = sst [smem:[#allocation18_spill]] %s3551_s1 }
   0x3   :  { %12 = vsyncpa [#allocation5], 0 }
   0x4   :  { %14 = vsyncpa [#allocation5 + $0x1], 0 }
   0x5   :  { %15 = vsyncpa [#allocation8], 0 }
   0x6   :  { %17 = vsyncpa [#allocation8 + $0x1], 0 }
   0x7   :  { %18 = vsyncpa [#allocation6], 0 }
   0x8   :  { %20 = vsyncpa [#allocation6 + $0x1], 0  ;;  %s2573_s24 = smov 0   ;;  %s2575_s25 = smov 0  }
   0x9   :  { %s2577_s26 = smov 0   ;;  %s2579_s27 = smov 0  }
   0xa LB: > { %3583 = sst [smem:[#allocation14_spill]] %s2506_s27  ;;  %s2594_s28 = sadd.s32 4294967295, %s2506_s27   ;;  %s2506_s27 = sphi %s2579_s27, %s3649_s27   ;;  %s2502_s26 = sphi %s2577_s26, %s3653_s26   ;;  %s2498_s25 = sphi %s2575_s25, %s3652_s25   ;;  %s2494_s24 = sphi %s2573_s24, %s3651_s24  }
   0xb   : > { %s2071_s29 = sadd.s32 4294967294, %s2506_s27   ;;  %s2598_s30 = sadd.s32 1, %s2506_s27  }
   0xc   : > { %3584 = sst [smem:[#allocation15_spill]] %s2598_s30  ;;  %s33_s8 = sadd.s32 1, %s2502_s26 }
   0xd   : > { %s30_s9 = ssub.s32 %s2506_s27, %s2598_s30  ;;  %p40_p0 = scmp.ne.s32.totalorder %s2502_s26, %s2498_s25 }
   0xe   : > { %p31_p1 = scmp.eq.s32.totalorder %s30_s9, 0  ;;  %p41_p2 = scmp.eq.s32.totalorder %s2506_s27, 0 }
   0xf   : > { %p46_p3 = scmp.ne.s32.totalorder %s2498_s25, %s2494_s24  ;;  %p47_p4 = scmp.eq.s32.totalorder %s2594_s28, 0 }
  0x10   : > { %s2610_s10 = scalar_select %p31_p1, %s2502_s26, %s33_s8  }
  0x11   : > { %p42_p5 = por %p41_p2, %p40_p0  ;;  %p2612_p6 = por %p47_p4, %p46_p3 }
  0x12   : > { %3585 = sst [smem:[#allocation16_spill]] %s2610_s10  ;;  %p206_p7 = scmp.eq.s32.totalorder %s2594_s28, 1 }
  0x13   : > { %s3586_s11 = scalar_select %p2612_p6, 1, 0 }
  0x14   : > { %p212_p8 = scmp.eq.s32.totalorder %s2071_s29, 1  ;;  %p2260_p10 = scmp.lt.s32.totalorder %s2506_s27, 2 }
  0x15   : > { %p2619_p11 = por %p206_p7, %p40_p0  ;;  %s3558_s14 = sand.u32 1, %s2502_s26  }
  0x16   : > { %p2623_p12 = por %p212_p8, %p46_p3  ;;  %s2629_s15 = sshll.u32 %s2506_s27, 9 }
  0x17   : > { %s3587_s12 = scalar_select %p2619_p11, 1, 0 }
  0x18   : > { %s3588_s13 = scalar_select %p2623_p12, 1, 0 }
  0x19   : > { %s2633_s16 = sshll.u32 %s3558_s14, 5  ;;  %p2635_p13 = pnand %p2260_p10, %p42_p5 }
  0x1a   : > { %s265_s18 = sand.u32 1, %s2506_s27   ;;  %s3590_s1 = sld [smem:[#allocation18_spill]] }
  0x1b   : > { %s269_s22 = scalar_lea.vmem [#allocation7], %s2633_s16  ;;  %s2650_s29 = scalar_lea.sflag [#allocation8], %s265_s18 }
  0x1c   : > { %s276_s23 = sshll.u32 %s269_s22, 4  ;;  %p2656_p2 = pneg %p2635_p13  ;;  %s2647_s23 = int_to_ptr.vmem [resolvable:$true] %s276_s23 }
  0x20   : > { %s2644_s21 = scalar_lea.hbm %s3590_s1, %s2629_s15  ;;  %s2351_s22 = scalar_lea.hbm %s3590_s1, 1024 }
  0x21   : > { %s2346_s8 = scalar_lea.hbm %s2644_s21, 512  ;;  %p2352_p5 = scmp.lt.u32.totalorder %s2644_s21, %s3590_s1 }
  0x22   : > { %p2347_p1 = scmp.ne.s32.totalorder %s2644_s21, %s2346_s8  ;;  %p2353_p7 = scmp.lt.u32.totalorder %s2351_s22, %s2346_s8 }
  0x23   : > { %p2355_p10 = scmp.lt.u32.totalorder %s2346_s8, %s2644_s21 }
  0x24   : > { %p2349_p3 = pnand %p2656_p2, %p2347_p1  ;;  %p2354_p8 = por %p2353_p7, %p2352_p5 }
  0x26   : > { %p2350_p4 = pneg %p2349_p3  ;;  %p2356_p9 = por %p2355_p10, %p2354_p8 }
  0x28   : > { %p2357_p0 = pnand %p2356_p9, %p2350_p4 }
  0x2a   : > { %2360 = shalt.err (!%p2357_p0)
}
  0x2b   : > { %s2361_s18 = scalar_lea.vmem %s2647_s23, 512  ;;  %s2508_s19 = smov [#allocation7]  }
  0x2c   : > { %p2362_p1 = scmp.ne.s32.totalorder %s2647_s23, %s2361_s18  ;;  %s2366_s20 = sshll.u32 %s2508_s19, 4  ;;  %s2367_s20 = int_to_ptr.vmem [resolvable:$false] %s2366_s20 }
  0x2d   : > { %s2368_s10 = scalar_lea.vmem %s2367_s20, 1024  ;;  %p2369_p11 = scmp.lt.s32.totalorder %s2647_s23, %s2367_s20 }
  0x2e   : > { %p2364_p3 = pnand %p2362_p1, %p2656_p2  ;;  %p2370_p6 = scmp.lt.s32.totalorder %s2368_s10, %s2361_s18 }
  0x30   : > { %p2365_p12 = pneg %p2364_p3  ;;  %p2371_p5 = por %p2370_p6, %p2369_p11 }
  0x32   : > { %p2372_p7 = pnand %p2371_p5, %p2365_p12 }
  0x34   : > { %2375 = shalt.err (!%p2372_p7)
}
  0x35   : > { %s3561_s14 = smov 128   ;;  %s3563_s8 = smov 8  }
  0x36   : > { %2252 = dma.hbm_to_vmem [thread:$0]  (!%p2635_p13), %s2644_s21, 512, %s2647_s23, %s2650_s29, %s3561_s14, %s3561_s14, %s3563_s8  }
  0x37   : > { %p305_p6 = scmp.lt.s32.totalorder %s2506_s27, 3  ;;  %s3592_s0 = sld [smem:[#allocation17_spill]] }
  0x38   : > { %p3593_p9 = scmp.ge.s32.totalorder %s2506_s27, 1  ;;  %s248_s10 = scalar_lea.vmem [#allocation4], %s2633_s16 }
  0x39   : > { %s255_s1 = sshll.u32 %s248_s10, 4  ;;  %s3595_s21 = sand.u32 1, %s2502_s26   ;;  %s2697_s1 = int_to_ptr.vmem [resolvable:$true] %s255_s1 }
  0x3a   : > { %p2692_p11 = pnand %p3593_p9, %p305_p6  ;;  %s2701_s23 = scalar_lea.sflag [#allocation5], %s3595_s21 }
  0x3c   : > { %s3594_s20 = scalar_select %p2692_p11, 1, 0 }
  0x3d   : > { %s2688_s19 = scalar_lea.hbm %s3592_s0, %s2629_s15  ;;  %s2381_s8 = scalar_lea.hbm %s3592_s0, 1024 }
  0x3e   : > { %s2376_s14 = scalar_lea.hbm %s2688_s19, 512  ;;  %p2382_p8 = scmp.lt.u32.totalorder %s2688_s19, %s3592_s0 }
  0x3f   : > { %p2377_p12 = scmp.ne.s32.totalorder %s2688_s19, %s2376_s14  ;;  %p2383_p10 = scmp.lt.u32.totalorder %s2381_s8, %s2376_s14 }
  0x40   : > { %p2385_p3 = scmp.lt.u32.totalorder %s2376_s14, %s2688_s19 }
  0x41   : > { %p2379_p0 = pnand %p2377_p12, %p2656_p2  ;;  %p2384_p1 = por %p2383_p10, %p2382_p8 }
  0x43   : > { %p2380_p4 = pneg %p2379_p0  ;;  %p2386_p5 = por %p2385_p3, %p2384_p1 }
  0x45   : > { %p2387_p7 = pnand %p2386_p5, %p2380_p4 }
  0x47   : > { %2390 = shalt.err (!%p2387_p7)
}
  0x48   : > { %s2391_s10 = scalar_lea.vmem %s2697_s1, 512  ;;  %s2511_s21 = smov [#allocation4]  }
  0x49   : > { %p2392_p6 = scmp.ne.s32.totalorder %s2697_s1, %s2391_s10  ;;  %s2396_s22 = sshll.u32 %s2511_s21, 4  ;;  %s2397_s22 = int_to_ptr.vmem [resolvable:$false] %s2396_s22 }
  0x4a   : > { %s2398_s27 = scalar_lea.vmem %s2397_s22, 1024  ;;  %p2399_p0 = scmp.lt.s32.totalorder %s2697_s1, %s2397_s22 }
  0x4b   : > { %p2394_p9 = pnand %p2392_p6, %p2656_p2  ;;  %p2400_p11 = scmp.lt.s32.totalorder %s2398_s27, %s2391_s10 }
  0x4d   : > { %p2395_p12 = pneg %p2394_p9  ;;  %p2401_p8 = por %p2400_p11, %p2399_p0 }
  0x4f   : > { %p2402_p10 = pnand %p2401_p8, %p2395_p12 }
  0x51   : > { %2405 = shalt.err (!%p2402_p10)
}
  0x52   : > { %s3596_s30 = smov 8   ;;  %s3597_s14 = smov 128  }
  0x53   : > { %2249 = dma.hbm_to_vmem [thread:$0]  (!%p2635_p13), %s2688_s19, 512, %s2697_s1, %s2701_s23, %s3597_s14, %s3597_s14, %s3596_s30  }
  0x54   : > { %s2732_s21 = scalar_lea.hbm %s3552_s2, %s2629_s15  ;;  %s290_s10 = scalar_lea.vmem [#allocation9], %s2633_s16 }
  0x55   : > { %s297_s22 = sshll.u32 %s290_s10, 4  ;;  %s2406_s27 = scalar_lea.hbm %s2732_s21, 512  ;;  %s2735_s22 = int_to_ptr.vmem [resolvable:$true] %s297_s22 }
  0x56   : > { %p2407_p11 = scmp.ne.s32.totalorder %s2732_s21, %s2406_s27  ;;  %s2411_s19 = scalar_lea.hbm %s3552_s2, 1024 }
  0x57   : > { %p2412_p3 = scmp.lt.u32.totalorder %s2732_s21, %s3552_s2  ;;  %p2413_p5 = scmp.lt.u32.totalorder %s2411_s19, %s2406_s27 }
  0x58   : > { %p2409_p4 = pnand %p2407_p11, %p2656_p2  ;;  %p2415_p6 = scmp.lt.u32.totalorder %s2406_s27, %s2732_s21 }
  0x59   : > { %p2414_p7 = por %p2413_p5, %p2412_p3 }
  0x5a   : > { %p2410_p1 = pneg %p2409_p4 }
  0x5b   : > { %p2416_p9 = por %p2415_p6, %p2414_p7 }
  0x5d   : > { %p2417_p12 = pnand %p2416_p9, %p2410_p1 }
  0x5f   : > { %2420 = shalt.err (!%p2417_p12)
}
  0x60   : > { %s2421_s16 = scalar_lea.vmem %s2735_s22, 512  ;;  %s2512_s0 = smov [#allocation9]  }
  0x61   : > { %p2422_p0 = scmp.ne.s32.totalorder %s2735_s22, %s2421_s16  ;;  %s2426_s8 = sshll.u32 %s2512_s0, 4  ;;  %s2427_s8 = int_to_ptr.vmem [resolvable:$false] %s2426_s8 }
  0x62   : > { %s2428_s18 = scalar_lea.vmem %s2427_s8, 1024  ;;  %p2429_p11 = scmp.lt.s32.totalorder %s2735_s22, %s2427_s8 }
  0x63   : > { %p2424_p8 = pnand %p2422_p0, %p2656_p2  ;;  %p2430_p4 = scmp.lt.s32.totalorder %s2428_s18, %s2421_s16 }
  0x65   : > { %p2425_p10 = pneg %p2424_p8  ;;  %p2431_p3 = por %p2430_p4, %p2429_p11 }
  0x67   : > { %p2432_p5 = pnand %p2431_p3, %p2425_p10 }
  0x69   : > { %2435 = shalt.err (!%p2432_p5)
}
  0x6a   : > { %2255 = dma.hbm_to_vmem [thread:$0]  (!%p2635_p13), %s2732_s21, 512, %s2735_s22, %s2650_s29, %s3597_s14, %s3597_s14, %s3596_s30  }
  0x6b   : > { %p3598_p2 = scmp.ne.s32.totalorder %s3594_s20, 0 }
  0x6c   : > { %s2765_s9 = sand.u32 (!%p3598_p2), 1, %s2498_s25   ;;  %p3599_p1 = scmp.ne.s32.totalorder (!%p3598_p2), %s3586_s11, 0 }
  0x6d   : > { %309 = sbr.rel (%p3598_p2) target bundleno = 2065 (0x811), region = 48  ;;  %s2768_s10 = sshll.u32 (!%p3598_p2), %s2765_s9, 5 }
  0x6e   : > { %s312_s17 = scalar_lea.sflag (!%p3598_p2), [#allocation5], %s2765_s9  ;;  %s2772_s27 = scalar_lea.vmem (!%p3598_p2), [#allocation4], %s2768_s10 }
  0x74   : > { %2481 = dma.done.wait (%p3599_p1), %s312_s17, 512  }
  0x75   : > { %2483 = vsyncadd (%p3599_p1), %s312_s17, 4294966784  ;;  %s320_s29 = sand.u32 1, %s2594_s28   ;;  %s2780_s30 = scalar_lea.vmem [#allocation7], %s2768_s10 }
  0x76   : > { %s321_s20 = scalar_lea.sflag [#allocation8], %s320_s29 }
  0x77   : > { %2485 = dma.done.wait (%p3599_p1), %s321_s20, 1024  }
  0x78   : > { %2487 = vsyncadd (%p3599_p1), %s321_s20, 4294966272  ;;  %v2317_v0 = vld [vmem:[%s3555_s5] sm:$0xff]   ;;  %v2319_v2 = vld [vmem:[%s3555_s5 + $0x8] sm:$0xff]   ;;  %vm3568_vm0 = vcmask 261120   ;;  %s2815_s17 = scalar_lea.vmem [#allocation9], %s2768_s10  ;;  %vm673_vm1 = vcmask 1045509  }
  0x79   : > { %v2318_v1 = vld [vmem:[%s3555_s5] sm:$0xff]   ;;  %2179 = vmatprep.subr.bf16.mxu0 %v2317_v0  ;;  %v2320_v3 = vld [vmem:[%s3555_s5 + $0x8] sm:$0xff]   ;;  %v375_v4 = vld [vmem:[%s2772_s27] sm:$0xff]  ;;  %vm676_vm2 = vcmask 1046534   ;;  %vm679_vm3 = vcmask 1047559   ;;  %vm474_vm4 = vcmask 1041409  }
  0x7a   : > { %2187 = vmatprep.subr.bf16.mxu1 %v2318_v1  ;;  %2180 = vmatpush3.bf16.msra.mxu0 %v2317_v0  ;;  %v376_v5 = vld [vmem:[%s2772_s27 + $0x8] sm:$0xff]  ;;  %v574_v6 = vld [vmem:[%s2780_s30] sm:$0xff]  ;;  %v377_v9 = vld [vmem:[%s2772_s27 + $0x10] sm:$0xff]  ;;  %vm477_vm5 = vcmask 1042434   ;;  %vm480_vm6 = vcmask 1043459   ;;  %s2513_s29 = smov 8  }
  0x7b   : > { %2188 = vmatpush3.bf16.msra.mxu1 %v2318_v1  ;;  %2181 = vmatprep.subr.bf16.mxu0 %v2319_v2  ;;  %v379_v7 = vpack.c.bf16 %v376_v5, %v375_v4  ;;  %v575_v8 = vld [vmem:[%s2780_s30 + $0x8] sm:$0xff]  ;;  %v378_v10 = vld [vmem:[%s2772_s27 + $0x18] sm:$0xff]  ;;  %v576_v13 = vld [vmem:[%s2780_s30 + $0x10] sm:$0xff]  ;;  %s2514_s20 = smov 40   ;;  %s2515_s14 = smov 16   ;;  %vm484_vm7 = vcmask 58368  }
  0x7c   : > { %2189 = vmatprep.subr.bf16.mxu1 %v2320_v3  ;;  %v578_v11 = vpack.c.bf16 %v575_v8, %v574_v6  ;;  %v380_v12 = vpack.c.bf16 %v378_v10, %v377_v9  ;;  %v577_v14 = vld [vmem:[%s2780_s30 + $0x18] sm:$0xff]  ;;  %v2321_v16 = vld [vmem:[%s3555_s5] sm:$0xff]   ;;  %v2322_v17 = vld [vmem:[%s3555_s5 + $0x8] sm:$0xff]   ;;  %s2516_s21 = smov 24   ;;  %s2517_s22 = smov 32   ;;  %vm683_vm8 = vcmask 60418  }
  0x7d   : > { %2183 = vmatprep.mubr.msk.bf16.mxu0 %vm3568_vm0, %v379_v7  ;;  %v579_v15 = vpack.c.bf16 %v577_v14, %v576_v13  ;;  %v772_v18 = vld [vmem:[%s2815_s17] sm:$0xff]  ;;  %v773_v19 = vld [vmem:[%s2815_s17 + $0x8] sm:$0xff]  ;;  %v774_v21 = vld [vmem:[%s2815_s17 + $0x10] sm:$0xff]  ;;  %s2518_s1 = smov 48   ;;  %s2519_s19 = smov 56   ;;  %vm2521_vm9 = vmmov 0  }
  0x7e   : > { %2182 = vmatpush3.bf16.msra.mxu0 %v2319_v2  ;;  %2191 = vmatprep.mubr.msk.bf16.mxu1 %vm3568_vm0, %v578_v11  ;;  %v776_v20 = vpack.c.bf16 %v773_v19, %v772_v18  ;;  %v775_v22 = vld [vmem:[%s2815_s17 + $0x18] sm:$0xff]  ;;  %vm496_vm10 = vcmask 123968   ;;  %vm508_vm11 = vcmask 189568   ;;  %vm696_vm12 = vcmask 126018   ;;  %s2525_s18 = smov 120   ;;  %s373_s11 = scalar_lea.vmem [#allocation10], %s2768_s10 }
  0x7f   : > { %2190 = vmatpush3.bf16.msra.mxu1 %v2320_v3  ;;  %2195 = vmatprep.subr.bf16.mxu0 %v2321_v16  ;;  %v777_v23 = vpack.c.bf16 %v775_v22, %v774_v21  ;;  %vm709_vm13 = vcmask 191618   ;;  %vm722_vm14 = vcmask 257218   ;;  %vm520_vm15 = vcmask 255168   ;;  %s1955_s15 = sshll.u32 %s373_s11, 4  ;;  %p3645_p7 = scmp.ne.s32.totalorder %s3587_s12, 0  ;;  %s3497_s15 = int_to_ptr.vmem [resolvable:$true] %s1955_s15 }
  0x80   : > { %s2436_s16 = scalar_lea.vmem %s3497_s15, 512  ;;  %s2531_s0 = smov [#allocation10]  }
  0x81   : > { %2184 = vmatmul.mubr.msk.bf16.vlgmr.msra.gmra.mrb[0].mxu0 %vm3568_vm0, %v380_v12  ;;  %p2437_p13 = scmp.ne.s32.totalorder %s3497_s15, %s2436_s16  ;;  %s2440_s8 = sshll.u32 %s2531_s0, 4  ;;  %s2441_s8 = int_to_ptr.vmem [resolvable:$false] %s2440_s8 }
  0x82   : > { %2192 = vmatmul.mubr.msk.bf16.vlgmr.msra.gmra.mrb[0].mxu1 %vm3568_vm0, %v579_v15  ;;  %2196 = vmatpush3.bf16.msra.mxu0 %v2321_v16  ;;  %p2443_p12 = scmp.lt.s32.totalorder %s3497_s15, %s2441_s8 }
  0x83   : > { %2197 = vmatprep.subr.bf16.mxu0 %v2322_v17  ;;  %2199 = vmatprep.mubr.msk.bf16.mxu0 %vm3568_vm0, %v776_v20  ;;  %p2438_p6 = pnand %p2437_p13, %p3645_p7 }
  0x85   : > { %p2439_p9 = pneg %p2438_p6 }
  0x86   : > { %2198 = vmatpush3.bf16.msra.mxu0 %v2322_v17 }
  0x89   : > { %2200 = vmatmul.mubr.msk.bf16.vlgmr.msra.gmra.mrb[4].mxu0 %vm3568_vm0, %v777_v23  ;;  %vm1492_vm0 = vsmask.f32 7938 }
 0x154   : > { %v2185_v24 = vpop.f32.mrb[0].mxu0 }
 0x155   : > { %v2141_v25 = vpack.c.bf16 %v2185_v24, %v2185_v24  ;;  %v2193_v26 = vpop.f32.mrb[0].mxu1  ;;  %v438_v27 = vpop.f32.mrb[1].mxu0 }
 0x156   : > { %v2145_v28 = vpack.c.bf16 %v2193_v26, %v2193_v26  ;;  %v2139_v29 = vpack.c.bf16 %v438_v27, %v438_v27  ;;  %v636_v30 = vpop.f32.mrb[1].mxu1  ;;  %v2186_v31 = vpop.f32.mrb[2].mxu0 }
 0x157   : > { %v2825_v32 = vunpack.c.l.b16 %v2141_v25  ;;  %v2143_v33 = vpack.c.bf16 %v636_v30, %v636_v30  ;;  %v2142_v34 = vpack.c.bf16 %v2186_v31, %v2186_v31  ;;  %v2194_v35 = vpop.f32.mrb[2].mxu1  ;;  %v441_v36 = vpop.f32.mrb[3].mxu0 }
 0x158   : > { %v2827_v37 = vunpack.c.l.b16 %v2145_v28  ;;  %v2829_v38 = vunpack.c.l.b16 %v2139_v29  ;;  %v2146_v39 = vpack.c.bf16 %v2194_v35, %v2194_v35  ;;  %v2140_v40 = vpack.c.bf16 %v441_v36, %v441_v36  ;;  %v639_v41 = vpop.f32.mrb[3].mxu1 }
 0x159   : > { %v2831_v42 = vunpack.c.l.b16 %v2143_v33  ;;  %v2833_v43 = vunpack.c.l.b16 %v2142_v34  ;;  %v2144_v44 = vpack.c.bf16 %v639_v41, %v639_v41  ;;  %v488_v45 = vrot.slane %v2825_v32, 7 }
 0x15a   : > { %v2836_v46 = vunpack.c.l.b16 %v2146_v39  ;;  %v2838_v47 = vunpack.c.l.b16 %v2140_v40  ;;  %v738_v48 = vrot.slane %v2827_v37, 7  ;;  %v486_v49 = vrot.slane %v2829_v38, 1 }
 0x15b   : > { %v2842_v50 = vunpack.c.l.b16 %v2144_v44  ;;  %v736_v51 = vrot.slane %v2831_v42, 1  ;;  %v490_v52 = vrot.slane %v2833_v43, 6  ;;  %v498_v53 = vrot.slane %v2829_v38, 2 }
 0x15c   : > { %v740_v54 = vrot.slane %v2836_v46, 6  ;;  %v487_v55 = vsel %vm474_vm4, %v2838_v47, %v486_v49  ;;  %v2201_v56 = vpop.f32.mrb[4].mxu0  ;;  %v499_v57 = vrot.slane %v2838_v47, 1  ;;  %v502_v58 = vrot.slane %v2833_v43, 7 }
 0x15d   : > { %v737_v59 = vsel %vm673_vm1, %v2842_v50, %v736_v51  ;;  %v489_v60 = vsel %vm477_vm5, %v488_v45, %v487_v55  ;;  %v2149_v61 = vpack.c.bf16 %v2201_v56, %v2201_v56  ;;  %v685_v62 = vrot.slane %v2831_v42, 5  ;;  %v834_v63 = vpop.f32.mrb[5].mxu0 }
 0x15e   : > { %v739_v0 = vsel %vm676_vm2, %v738_v48, %v737_v59  ;;  %v491_v1 = vsel %vm480_vm6, %v490_v52, %v489_v60  ;;  %v500_v2 = vsel %vm474_vm4, %v499_v57, %v498_v53  ;;  %v686_v3 = vrot.slane %v2842_v50, 4  ;;  %v2202_v4 = vpop.f32.mrb[6].mxu0 }
 0x15f   : > { %v741_v5 = vsel %vm679_vm3, %v740_v54, %v739_v0  ;;  %v492_v6 = vpack.c.b16 %v491_v1, %v491_v1  ;;  %v2861_v7 = vunpack.c.l.b16 %v2149_v61  ;;  %v501_v8 = vsel %vm477_vm5, %v2825_v32, %v500_v2  ;;  %v837_v9 = vpop.f32.mrb[7].mxu0 }
 0x160   : > { %v742_v10 = vpack.c.b16 %v741_v5, %v741_v5  ;;  %v503_v11 = vsel %vm480_vm6, %v502_v58, %v501_v8  ;;  %v687_v12 = vsel %vm673_vm1, %v686_v3, %v685_v62  ;;  %v688_v13 = vrot.slane %v2827_v37, 3 }
 0x161   : > { %493 = vrot.lane.b32.xlu0 %v492_v6, %s2513_s29  ;;  %v504_v14 = vpack.c.b16 %v503_v11, %v503_v11  ;;  %v690_v15 = vrot.slane %v2836_v46, 2  ;;  %v2147_v16 = vpack.c.bf16 %v834_v63, %v834_v63  ;;  %v2150_v17 = vpack.c.bf16 %v2202_v4, %v2202_v4 }
 0x162   : > { %743 = vrot.lane.b32.xlu1 %v742_v10, %s2514_s20  ;;  %v689_v18 = vsel %vm676_vm2, %v688_v13, %v687_v12  ;;  %v2148_v19 = vpack.c.bf16 %v837_v9, %v837_v9  ;;  %v711_v20 = vrot.slane %v2831_v42, 7  ;;  %v712_v21 = vrot.slane %v2842_v50, 6 }
 0x163   : > { %v691_v22 = vsel %vm679_vm3, %v690_v15, %v689_v18  ;;  %v2875_v23 = vunpack.c.l.b16 %v2147_v16  ;;  %v2877_v24 = vunpack.c.l.b16 %v2150_v17  ;;  %v714_v25 = vrot.slane %v2827_v37, 5 }
 0x164   : > { %v692_v26 = vpack.c.b16 %v691_v22, %v691_v22  ;;  %v2880_v27 = vunpack.c.l.b16 %v2148_v19  ;;  %v713_v28 = vsel %vm673_vm1, %v712_v21, %v711_v20  ;;  %v716_v29 = vrot.slane %v2836_v46, 4 }
 0x165   : > { %v715_v30 = vsel %vm676_vm2, %v714_v25, %v713_v28  ;;  %v698_v31 = vrot.slane %v2831_v42, 6  ;;  %v699_v33 = vrot.slane %v2842_v50, 5  ;;  %v701_v34 = vrot.slane %v2827_v37, 4 }
 0x166   : > { %505 = vrot.lane.b32.xlu1 %v504_v14, %s2515_s14  ;;  %693 = vrot.lane.b32.xlu0 %v692_v26, %s2513_s29  ;;  %v717_v35 = vsel %vm679_vm3, %v716_v29, %v715_v30  ;;  %v703_v36 = vrot.slane %v2836_v46, 3  ;;  %v522_v39 = vrot.slane %v2829_v38, 4  ;;  %v523_v40 = vrot.slane %v2838_v47, 3 }
 0x167   : > { %v718_v41 = vpack.c.b16 %v717_v35, %v717_v35  ;;  %v700_v44 = vsel %vm673_vm1, %v699_v33, %v698_v31  ;;  %v525_v45 = vrot.slane %v2825_v32, 2  ;;  %v527_v48 = vrot.slane %v2833_v43, 1 }
 0x168   : > { %v702_v49 = vsel %vm676_vm2, %v701_v34, %v700_v44  ;;  %v524_v51 = vsel %vm474_vm4, %v523_v40, %v522_v39  ;;  %v510_v52 = vrot.slane %v2829_v38, 3  ;;  %v511_v53 = vrot.slane %v2838_v47, 2 }
 0x169   : > { %v704_v54 = vsel %vm679_vm3, %v703_v36, %v702_v49  ;;  %v526_v55 = vsel %vm477_vm5, %v525_v45, %v524_v51  ;;  %v513_v56 = vrot.slane %v2825_v32, 1  ;;  %v548_v57 = vrot.slane %v2829_v38, 6 }
 0x16a   : > { %719 = vrot.lane.b32.xlu1 %v718_v41, %s2516_s21  ;;  %v705_v58 = vpack.c.b16 %v704_v54, %v704_v54  ;;  %v528_v59 = vsel %vm480_vm6, %v527_v48, %v526_v55  ;;  %v512_v60 = vsel %vm474_vm4, %v511_v53, %v510_v52  ;;  %v549_v61 = vrot.slane %v2838_v47, 5 }
 0x16b   : > { %v529_v62 = vpack.c.b16 %v528_v59, %v528_v59  ;;  %v514_v63 = vsel %vm477_vm5, %v513_v56, %v512_v60  ;;  %v551_v0 = vrot.slane %v2825_v32, 4  ;;  %v553_v1 = vrot.slane %v2833_v43, 3 }
 0x16c   : > { %706 = vrot.lane.b32.xlu0 %v705_v58, %s2515_s14  ;;  %v515_v2 = vsel %vm480_vm6, %v2833_v43, %v514_v63  ;;  %v550_v3 = vsel %vm474_vm4, %v549_v61, %v548_v57  ;;  %v724_v4 = vrot.slane %v2842_v50, 7  ;;  %v726_v5 = vrot.slane %v2827_v37, 6 }
 0x16d   : > { %v516_v6 = vpack.c.b16 %v515_v2, %v515_v2  ;;  %v552_v8 = vsel %vm477_vm5, %v551_v0, %v550_v3  ;;  %v728_v9 = vrot.slane %v2836_v46, 5  ;;  %v878_v10 = vrot.slane %v2875_v23, 1 }
 0x16e   : > { %530 = vrot.lane.b32.xlu1 %v529_v62, %s2517_s22  ;;  %v554_v11 = vsel %vm480_vm6, %v553_v1, %v552_v8  ;;  %v725_v12 = vsel %vm673_vm1, %v724_v4, %v2831_v42  ;;  %v880_v13 = vrot.slane %v2861_v7, 7  ;;  %v882_v14 = vrot.slane %v2877_v24, 6 }
 0x16f   : > { %v555_v15 = vpack.c.b16 %v554_v11, %v554_v11  ;;  %v727_v16 = vsel %vm676_vm2, %v726_v5, %v725_v12  ;;  %v879_v17 = vsel %vm474_vm4, %v2880_v27, %v878_v10  ;;  %v535_v18 = vrot.slane %v2829_v38, 5 }
 0x170   : > { %517 = vrot.lane.b32.xlu0 %v516_v6, %s2516_s21  ;;  %v729_v19 = vsel %vm679_vm3, %v728_v9, %v727_v16  ;;  %v881_v20 = vsel %vm477_vm5, %v880_v13, %v879_v17  ;;  %v536_v21 = vrot.slane %v2838_v47, 4  ;;  %v538_v22 = vrot.slane %v2825_v32, 3 }
 0x171   : > { %v730_v25 = vpack.c.b16 %v729_v19, %v729_v19  ;;  %v883_v26 = vsel %vm480_vm6, %v882_v14, %v881_v20  ;;  %v540_v28 = vrot.slane %v2833_v43, 2  ;;  %v889_v29 = vrot.slane %v2875_v23, 2 }
 0x172   : > { %556 = vrot.lane.b32.xlu1 %v555_v15, %s2518_s1  ;;  %v884_v30 = vpack.c.b16 %v883_v26, %v883_v26  ;;  %v537_v31 = vsel %vm474_vm4, %v536_v21, %v535_v18  ;;  %v890_v33 = vrot.slane %v2880_v27, 1  ;;  %v893_v34 = vrot.slane %v2877_v24, 7 }
 0x173   : > { %v539_v35 = vsel %vm477_vm5, %v538_v22, %v537_v31  ;;  %v748_v36 = vrot.slane %v2831_v42, 2  ;;  %v749_v39 = vrot.slane %v2842_v50, 1  ;;  %v752_v40 = vrot.slane %v2836_v46, 7 }
 0x174   : > { %731 = vrot.lane.b32.xlu0 %v730_v25, %s2517_s22  ;;  %v541_v41 = vsel %vm480_vm6, %v540_v28, %v539_v35  ;;  %v891_v44 = vsel %vm474_vm4, %v890_v33, %v889_v29  ;;  %v911_v45 = vrot.slane %v2875_v23, 4  ;;  %v912_v48 = vrot.slane %v2880_v27, 3 }
 0x175   : > { %v542_v49 = vpack.c.b16 %v541_v41, %v541_v41  ;;  %v892_v51 = vsel %vm477_vm5, %v2861_v7, %v891_v44  ;;  %v750_v52 = vsel %vm673_vm1, %v749_v39, %v748_v36  ;;  %v914_v53 = vrot.slane %v2861_v7, 2 }
 0x176   : > { %885 = vrot.lane.b32.xlu1 %v884_v30, %s2513_s29  ;;  %v894_v54 = vsel %vm480_vm6, %v893_v34, %v892_v51  ;;  %v751_v55 = vsel %vm676_vm2, %v2827_v37, %v750_v52  ;;  %v913_v56 = vsel %vm474_vm4, %v912_v48, %v911_v45  ;;  %v916_v57 = vrot.slane %v2877_v24, 1 }
 0x177   : > { %v895_v58 = vpack.c.b16 %v894_v54, %v894_v54  ;;  %v753_v59 = vsel %vm679_vm3, %v752_v40, %v751_v55  ;;  %v915_v60 = vsel %vm477_vm5, %v914_v53, %v913_v56  ;;  %v561_v61 = vrot.slane %v2829_v38, 7 }
 0x178   : > { %543 = vrot.lane.b32.xlu0 %v542_v49, %s2514_s20  ;;  %v754_v62 = vpack.c.b16 %v753_v59, %v753_v59  ;;  %v917_v63 = vsel %vm480_vm6, %v916_v57, %v915_v60  ;;  %v562_v0 = vrot.slane %v2838_v47, 6  ;;  %v564_v1 = vrot.slane %v2825_v32, 5 }
 0x179   : > { %v918_v2 = vpack.c.b16 %v917_v63, %v917_v63  ;;  %v566_v3 = vrot.slane %v2833_v43, 4  ;;  %v935_v4 = vrot.slane %v2875_v23, 6  ;;  %v936_v5 = vrot.slane %v2880_v27, 5 }
 0x17a   : > { %896 = vrot.lane.b32.xlu1 %v895_v58, %s2515_s14  ;;  %v563_v6 = vsel %vm474_vm4, %v562_v0, %v561_v61  ;;  %v938_v8 = vrot.slane %v2861_v7, 4  ;;  %v940_v9 = vrot.slane %v2877_v24, 3  ;;  %v900_v10 = vrot.slane %v2875_v23, 3  ;;  %s2527_s14 = smov 104  }
 0x17b   : > { %v565_v11 = vsel %vm477_vm5, %v564_v1, %v563_v6  ;;  %v937_v12 = vsel %vm474_vm4, %v936_v5, %v935_v4  ;;  %v901_v13 = vrot.slane %v2880_v27, 2  ;;  %v903_v14 = vrot.slane %v2861_v7, 1 }
 0x17c   : > { %755 = vrot.lane.b32.xlu0 %v754_v62, %s2518_s1  ;;  %v567_v15 = vsel %vm480_vm6, %v566_v3, %v565_v11  ;;  %v939_v16 = vsel %vm477_vm5, %v938_v8, %v937_v12  ;;  %v760_v17 = vrot.slane %v2831_v42, 3  ;;  %v761_v18 = vrot.slane %v2842_v50, 2 }
 0x17d   : > { %v941_v19 = vsel %vm480_vm6, %v940_v9, %v939_v16  ;;  %v902_v20 = vsel %vm474_vm4, %v901_v13, %v900_v10  ;;  %v763_v21 = vrot.slane %v2827_v37, 1  ;;  %v568_v22 = vpack.c.b16 %v567_v15, %v567_v15 }
 0x17e   : > { %919 = vrot.lane.b32.xlu1 %v918_v2, %s2517_s22  ;;  %v904_v25 = vsel %vm477_vm5, %v903_v14, %v902_v20  ;;  %v762_v26 = vsel %vm673_vm1, %v761_v18, %v760_v17  ;;  %v923_v28 = vrot.slane %v2875_v23, 5  ;;  %v924_v31 = vrot.slane %v2880_v27, 4  ;;  %s2529_s22 = smov 112  }
 0x17f   : > { %v905_v29 = vsel %vm480_vm6, %v2877_v24, %v904_v25  ;;  %v764_v30 = vsel %vm676_vm2, %v763_v21, %v762_v26  ;;  %v926_v33 = vrot.slane %v2861_v7, 3  ;;  %v942_v34 = vpack.c.b16 %v941_v19, %v941_v19 }
 0x180   : > { %569 = vrot.lane.b32.xlu0 %v568_v22, %s2519_s19  ;;  %v765_v35 = vsel %vm679_vm3, %v2836_v46, %v764_v30  ;;  %v928_v36 = vrot.slane %v2877_v24, 2  ;;  %v947_v39 = vrot.slane %v2875_v23, 7  ;;  %v925_v40 = vsel %vm474_vm4, %v924_v31, %v923_v28 }
 0x181   : > { %v948_v41 = vrot.slane %v2880_v27, 6  ;;  %v950_v44 = vrot.slane %v2861_v7, 5  ;;  %v906_v45 = vpack.c.b16 %v905_v29, %v905_v29  ;;  %v927_v48 = vsel %vm477_vm5, %v926_v33, %v925_v40 }
 0x182   : > { %943 = vrot.lane.b32.xlu1 %v942_v34, %s2518_s1  ;;  %v952_v49 = vrot.slane %v2877_v24, 4  ;;  %v929_v51 = vsel %vm480_vm6, %v928_v36, %v927_v48  ;;  %v473_v53 = vrot.slane %v2838_v47, 7  ;;  %v671_v54 = vrot.slane %v2831_v42, 4  ;;  %s2530_s1 = smov 96  }
 0x183   : > { %v949_v52 = vsel %vm474_vm4, %v948_v41, %v947_v39  ;;  %v766_v55 = vpack.c.b16 %v765_v35, %v765_v35  ;;  %v476_v57 = vrot.slane %v2825_v32, 6  ;;  %v672_v58 = vrot.slane %v2842_v50, 3  ;;  %v2324_v35 = vld [vmem:[%s3553_s3] sm:$0x7f]  }
 0x184   : > { %907 = vrot.lane.b32.xlu0 %v906_v45, %s2516_s21  ;;  %v951_v56 = vsel %vm477_vm5, %v950_v44, %v949_v52  ;;  %v479_v60 = vrot.slane %v2833_v43, 5  ;;  %v475_v61 = vsel %vm474_vm4, %v473_v53, %v2829_v38  ;;  %v675_v47 = vrot.slane %v2827_v37, 2  ;;  %s2528_s21 = smov 88  }
 0x185   : > { %v953_v59 = vsel %vm480_vm6, %v952_v49, %v951_v56  ;;  %v930_v42 = vpack.c.b16 %v929_v51, %v929_v51  ;;  %v478_v62 = vsel %vm477_vm5, %v476_v57, %v475_v61  ;;  %v674_v63 = vsel %vm673_vm1, %v672_v58, %v671_v54 }
 0x186   : > { %767 = vrot.lane.b32.xlu1 %v766_v55, %s2519_s19  ;;  %v678_v32 = vrot.slane %v2836_v46, 1  ;;  %v481_v50 = vsel %vm480_vm6, %v479_v60, %v478_v62  ;;  %v677_v0 = vsel %vm676_vm2, %v675_v47, %v674_v63  ;;  %v869_v37 = vrot.slane %v2880_v27, 7  ;;  %v963_v27 = vld [vmem:[%s3554_s4] sm:$0xff] }
 0x187   : > { %v482_v43 = vpack.c.b16 %v481_v50, %v481_v50  ;;  %v871_v2 = vrot.slane %v2861_v7, 6  ;;  %v873_v3 = vrot.slane %v2877_v24, 5  ;;  %v954_v4 = vpack.c.b16 %v953_v59, %v953_v59 }
 0x188   : > { %931 = vrot.lane.b32.xlu0 %v930_v42, %s2514_s20  ;;  %v680_v38 = vsel %vm679_vm3, %v678_v32, %v677_v0  ;;  %v870_v46 = vsel %vm474_vm4, %v869_v37, %v2875_v23  ;;  %v2520_v8 = vmov 0.0   ;;  %v2522_v23 = vmov 0   ;;  %s2526_s20 = smov 80  }
 0x189   : > { %v681_v1 = vpack.c.b16 %v680_v38, %v680_v38  ;;  %485 = vst.msk [vmem:[#allocation2] sm:$0x3] %vm484_vm7, %v482_v43  ;;  %v872_v5 = vsel %vm477_vm5, %v871_v2, %v870_v46  ;;  %2203 = vmatprep.subr.bf16.mxu1 %v2520_v8  ;;  %2205 = vmatprep.mubr.msk.bf16.mxu1 %vm2521_vm9, %v2520_v8  ;;  %vm533_vm1 = vcmask 320768   ;;  %vm734_vm2 = vcmask 322818  }
 0x18a   : > { %v874_v6 = vsel %vm480_vm6, %v873_v3, %v872_v5  ;;  %2315 = vset.pattern.permute.xlu1 %v2522_v23  ;;  %vm746_vm3 = vcmask 388418   ;;  %vm546_vm4 = vcmask 386368   ;;  %vm559_vm5 = vcmask 451968  }
 0x18b   : > { %684 = vst.msk [vmem:[#allocation2] sm:$0xc] %vm683_vm8, %v681_v1  ;;  %v875_v7 = vpack.c.b16 %v874_v6, %v874_v6  ;;  %967 = vperm.xlu1 %2315, %v963_v27   ;;  %vm758_vm6 = vcmask 454018   ;;  %vm770_vm8 = vcmask 519618   ;;  %v964_v1 = vld [vmem:[%s3554_s4 + $0x8] sm:$0x1f] }
 0x18c   : > { %955 = vrot.lane.b32.xlu0 %v954_v4, %s2519_s19 }
 0x18d   : > { %877 = vst.msk [vmem:[#allocation2 + $0x4] sm:$0x3] %vm484_vm7, %v875_v7  ;;  %vm572_vm7 = vcmask 517568  }
 0x1d3   : > { %v494_v24 = vpop.permute.xlu0 %493 }
 0x1d4   : > { %v744_v9 = vpop.permute.xlu1 %743  ;;  %497 = vst.msk [vmem:[#allocation2] sm:$0x3] %vm496_vm10, %v494_v24 }
 0x1d8   : > { %v506_v10 = vpop.permute.xlu1 %505  ;;  %v694_v11 = vpop.permute.xlu0 %693 }
 0x1d9   : > { %509 = vst.msk [vmem:[#allocation2] sm:$0x3] %vm508_vm11, %v506_v10 }
 0x1da   : > { %697 = vst.msk [vmem:[#allocation2] sm:$0xc] %vm696_vm12, %v694_v11  ;;  %vm1067_vm12 = vcmask 1041408  }
 0x1dc   : > { %v720_v12 = vpop.permute.xlu1 %719 }
 0x1de   : > { %v707_v13 = vpop.permute.xlu0 %706 }
 0x1df   : > { %710 = vst.msk [vmem:[#allocation2] sm:$0xc] %vm709_vm13, %v707_v13  ;;  %vm1054_vm13 = vcmask 31744  }
 0x1e0   : > { %v531_v14 = vpop.permute.xlu1 %530  ;;  %723 = vst.msk [vmem:[#allocation2] sm:$0xc] %vm722_vm14, %v720_v12  ;;  %vm1317_vm14 = vcmask 57344  }
 0x1e2   : > { %v518_v15 = vpop.permute.xlu0 %517 }
 0x1e3   : > { %521 = vst.msk [vmem:[#allocation2] sm:$0x3] %vm520_vm15, %v518_v15 }
 0x1e4   : > { %v557_v16 = vpop.permute.xlu1 %556  ;;  %534 = vst.msk [vmem:[#allocation2] sm:$0x3] %vm533_vm1, %v531_v14 }
 0x1e6   : > { %v732_v17 = vpop.permute.xlu0 %731 }
 0x1e7   : > { %735 = vst.msk [vmem:[#allocation2] sm:$0xc] %vm734_vm2, %v732_v17  ;;  %vm1535_vm2 = vcmask 58369  }
 0x1e8   : > { %v886_v18 = vpop.permute.xlu1 %885  ;;  %747 = vst.msk [vmem:[#allocation2] sm:$0xc] %vm746_vm3, %v744_v9  ;;  %vm1536_vm3 = vsmask.f32 1280 }
 0x1e9   : > { %888 = vst.msk [vmem:[#allocation2 + $0x4] sm:$0x3] %vm496_vm10, %v886_v18  ;;  %vm989_vm10 = vcmask 1045504  }
 0x1ea   : > { %v544_v19 = vpop.permute.xlu0 %543 }
 0x1eb   : > { %547 = vst.msk [vmem:[#allocation2] sm:$0x3] %vm546_vm4, %v544_v19 }
 0x1ec   : > { %v897_v20 = vpop.permute.xlu1 %896  ;;  %560 = vst.msk [vmem:[#allocation2] sm:$0x3] %vm559_vm5, %v557_v16 }
 0x1ed   : > { %899 = vst.msk [vmem:[#allocation2 + $0x4] sm:$0x3] %vm508_vm11, %v897_v20  ;;  %vm985_vm11 = vcmask 97280  }
 0x1ee   : > { %v756_v21 = vpop.permute.xlu0 %755 }
 0x1ef   : > { %759 = vst.msk [vmem:[#allocation2] sm:$0xc] %vm758_vm6, %v756_v21  ;;  %vm1640_vm6 = vsmask.f32 2304 }
 0x1f0   : > { %v920_v22 = vpop.permute.xlu1 %919 }
 0x1f2   : > { %v570_v25 = vpop.permute.xlu0 %569 }
 0x1f3   : > { %573 = vst.msk [vmem:[#allocation2] sm:$0x3] %vm572_vm7, %v570_v25 }
 0x1f4   : > { %v944_v26 = vpop.permute.xlu1 %943 }
 0x1f6   : > { %v908_v28 = vpop.permute.xlu0 %907 }
 0x1f7   : > { %910 = vst.msk [vmem:[#allocation2 + $0x4] sm:$0x3] %vm520_vm15, %v908_v28  ;;  %vm1318_vm15 = vsmask.f32 256 }
 0x1f8   : > { %922 = vst.msk [vmem:[#allocation2 + $0x4] sm:$0x3] %vm533_vm1, %v920_v22  ;;  %v768_v29 = vpop.permute.xlu1 %767  ;;  %vm3099_vm1 = vmand %vm1317_vm14, %vm1318_vm15 }
 0x1f9   : > { %771 = vst.msk [vmem:[#allocation2] sm:$0xc] %vm770_vm8, %v768_v29  ;;  %vm3570_vm8 = vcmask 60419  }
 0x1fa   : > { %v932_v30 = vpop.permute.xlu0 %931 }
 0x1fb   : > { %934 = vst.msk [vmem:[#allocation2 + $0x4] sm:$0x3] %vm546_vm4, %v932_v30  ;;  %vm3262_vm4 = vmand %vm1535_vm2, %vm1536_vm3 }
 0x1fc   : > { %946 = vst.msk [vmem:[#allocation2 + $0x4] sm:$0x3] %vm559_vm5, %v944_v26  ;;  %vm1639_vm5 = vcmask 59394  }
 0x1fe   : > { %v956_v31 = vpop.permute.xlu0 %955 }
 0x1ff   : > { %958 = vst.msk [vmem:[#allocation2 + $0x4] sm:$0x3] %vm572_vm7, %v956_v31  ;;  %vm3270_vm7 = vmand %vm1639_vm5, %vm1640_vm6 }
 0x206   : > { %v2323_v33 = vld [vmem:[#allocation2] sm:$0x3f]  }
 0x207   : > { %v991_v34 = vsel %vm989_vm10, %v2323_v33, 0  ;;  %vm1744_vm10 = vsmask.f32 3328 }
 0x208   : > { %2204 = vmatpush3.bf16.msra.mxu1 %v991_v34 }
 0x209   : > { %2219 = vmatprep.subr.bf16.mxu1 %v2520_v8 }
 0x20a   : > { %v968_v36 = vpop.permute.xlu1 %967 }
 0x20b   : > { %2206 = vmatmul.mubr.msk.bf16.vlgmr.msra.gmra.mrb[4].mxu1 %vm985_vm11, %v2324_v35  ;;  %vm3280_vm11 = vmand %vm3570_vm8, %vm1744_vm10  ;;  %vm3571_vm8 = vcmask 126019  }
 0x20c   : > { %2227 = vmatprep.mubr.msk.bf16.mxu1 %vm2521_vm9, %v2520_v8  ;;  %vm1136_vm9 = vcmask 523264  }
 0x2de   : > { %v1027_v39 = vpop.f32.mrb[4].mxu1 }
 0x2df   : > { %v1028_v40 = vadd.f32 %v1027_v39, %v968_v36  ;;  %v2207_v41 = vpop.f32.mrb[5].mxu1 }
 0x2e0   : > { %v3065_v44 = vpop.f32.mrb[6].mxu1 }
 0x2e1   : > { %v1034_v45 = vpack.c.bf16 %v1028_v40, %v1028_v40  ;;  %v2208_v48 = vpop.f32.mrb[7].mxu1 }
 0x2e3   : > { %v1053_v49 = vrot.slane %v1034_v45, 2  ;;  %1036 = vxpose.xlu0.c.b16.start.end [1/1] (short) (narrow) %v1034_v45, 64 }
 0x2e5   : > { %2237 = vmatprep.subr.msk.bf16.mxu0 %vm1067_vm12, %v1053_v49  ;;  %v1069_v51 = vsel %vm1067_vm12, %v1053_v49, 0  ;;  %vm1409_vm12 = vcmask 122944  }
 0x2e6   : > { %2210 = vmatpush3.bf16.msra.mxu0 %v1069_v51 }
 0x2ec   : > { %2316 = vset.pattern.permute.xlu0 %v2522_v23 }
 0x349   : > { %v1044_v52 = vpop.trf.xlu0 }
 0x34a   : > { %2211 = vmatprep.mubr.msk.bf16.mxu0 %vm1054_vm13, %v1044_v52 }
 0x34d   : > { %v1045_v53 = vpop.trf.xlu0 }
 0x34e   : > { %2212 = vmatmul.mubr.msk.bf16.vlgmr.msra.gmra.mrb[8].mxu0 %vm1054_vm13, %v1045_v53 }
 0x351   : > { %v1046_v54 = vpop.trf.xlu0 }
 0x352   : > { %2215 = vmatprep.mubr.msk.bf16.mxu0 %vm1054_vm13, %v1046_v54 }
 0x355   : > { %v1047_v55 = vpop.trf.xlu0 }
 0x356   : > { %2216 = vmatmul.mubr.msk.bf16.gmra.mrb[12].mxu0 %vm1054_vm13, %v1047_v55  ;;  %v1245_v55 = vlaneseq  ;;  %vm3290_vm13 = vmand %vm1409_vm12, %vm1318_vm15  ;;  %vm3572_vm15 = vcmask 124994  }
 0x421   : > { %v2213_v56 = vpop.f32.mrb[8].mxu0 }
 0x422   : > { %v1105_v57 = vpop.f32.mrb[9].mxu0  ;;  %v1143_v47 = vsel %vm1136_vm9, %v2213_v56, -inf }
 0x423   : > { %v2214_v58 = vpop.f32.mrb[10].mxu0  ;;  %v1137_v59 = vsel %vm1136_vm9, %v1105_v57, -inf }
 0x424   : > { %1138 = vmax.xlane.f32.xlu1 %v1137_v59  ;;  %v1108_v60 = vpop.f32.mrb[11].mxu0  ;;  %v1146_v32 = vsel %vm1136_vm9, %v2214_v58, -inf  ;;  %v1246_v59 = vshrl.u32 %v1245_v55, 7 }
 0x425   : > { %v1140_v61 = vsel %vm1136_vm9, %v1108_v60, -inf }
 0x426   : > { %1141 = vmax.xlane.f32.xlu0 %v1140_v61  ;;  %v2523_v61 = vmov 1966171168  }
 0x428   : > { %1144 = vmax.xlane.f32.xlu1 %v1143_v47  ;;  %v1256_v47 = vunpack.c.l.s4 %v2523_v61 }
 0x429   : > { %v2217_v42 = vpop.f32.mrb[12].mxu0 }
 0x42a   : > { %v1121_v62 = vpop.f32.mrb[13].mxu0  ;;  %v1155_v43 = vsel %vm1136_vm9, %v2217_v42, -inf }
 0x42b   : > { %v2218_v63 = vpop.f32.mrb[14].mxu0  ;;  %v1149_v38 = vsel %vm1136_vm9, %v1121_v62, -inf }
 0x42c   : > { %1147 = vmax.xlane.f32.xlu1 %v1146_v32  ;;  %v1158_v50 = vsel %vm1136_vm9, %v2218_v63, -inf  ;;  %v1124_v0 = vpop.f32.mrb[15].mxu0  ;;  %v2524_v32 = vmov 286326784  }
 0x42d   : > { %1159 = vmax.xlane.f32.xlu0 %v1158_v50  ;;  %v1152_v37 = vsel %vm1136_vm9, %v1124_v0, -inf  ;;  %v1286_v50 = vunpack.c.l.s4 %v2524_v32 }
 0x430   : > { %1156 = vmax.xlane.f32.xlu1 %v1155_v43 }
 0x434   : > { %1150 = vmax.xlane.f32.xlu1 %v1149_v38 }
 0x438   : > { %1153 = vmax.xlane.f32.xlu1 %v1152_v37  ;;  %v1287_v37 = vunpack.c.0.s8 %v1286_v50 }
 0x449   : > { %972 = vperm.xlu1 %2315, %v964_v1  }
 0x4b1   : > { %v1139_v2 = vpop.xlane.xlu1 %1138 }
 0x4b2   : > { %v1161_v3 = vsub.f32 %v1105_v57, %v1139_v2 }
 0x4b3   : > { %v1142_v4 = vpop.xlane.xlu0 %1141 }
 0x4b4   : > { %v1169_v46 = vmul.f32 1.442695, %v1161_v3  ;;  %v1162_v5 = vsub.f32 %v1108_v60, %v1142_v4  ;;  %v1247_v60 = vsub.s32 4, %v1246_v59  ;;  %v3093_v3 = vsub.s32 %v1287_v37, %v1246_v59  ;;  %v1538_v37 = vld [vmem:[#allocation3] sm:$0x2] }
 0x4b5   : > { %v1145_v6 = vpop.xlane.xlu1 %1144 }
 0x4b6   : > { %v1171_v27 = vmul.f32 1.442695, %v1162_v5  ;;  %v1163_v7 = vsub.f32 %v2213_v56, %v1145_v6  ;;  %2328 = vpow2.f32 %v1169_v46 }
 0x4b8   : > { %2330 = vpow2.f32 %v1171_v27  ;;  %v1173_v23 = vmul.f32 1.442695, %v1163_v7  ;;  %v1645_v7 = vld [vmem:[#allocation3 + $0x4] sm:$0x4] }
 0x4b9   : > { %v1148_v24 = vpop.xlane.xlu1 %1147 }
 0x4ba   : > { %v1164_v9 = vsub.f32 %v2214_v58, %v1148_v24  ;;  %v1160_v10 = vpop.xlane.xlu0 %1159  ;;  %2332 = vpow2.f32 %v1173_v23  ;;  %v1320_v23 = vld [vmem:[#allocation3] sm:$0x1] }
 0x4bb   : > { %v1168_v11 = vsub.f32 %v2218_v63, %v1160_v10  ;;  %v1257_v63 = vunpack.c.0.s8 %v1256_v47 }
 0x4bc   : > { %v1175_v12 = vmul.f32 1.442695, %v1164_v9 }
 0x4bd   : > { %v1183_v13 = vmul.f32 1.442695, %v1168_v11  ;;  %v1157_v14 = vpop.xlane.xlu1 %1156  ;;  %v3088_v38 = vsub.s32 %v1257_v63, %v1246_v59 }
 0x4be   : > { %2334 = vpow2.f32 %v1175_v12  ;;  %v1167_v15 = vsub.f32 %v2217_v42, %v1157_v14  ;;  %v1323_v12 = vld [vmem:[#allocation3 + $0x4] sm:$0x1] }
 0x4bf   : > { %2336 = vpow2.f32 %v1183_v13  ;;  %v1326_v13 = vld [vmem:[#allocation3 + $0x8] sm:$0x1] }
 0x4c0   : > { %v1181_v16 = vmul.f32 1.442695, %v1167_v15  ;;  %v2329_v17 = vpop.eup %2328 }
 0x4c1   : > { %v1151_v18 = vpop.xlane.xlu1 %1150 }
 0x4c2   : > { %v2331_v19 = vpop.eup %2330  ;;  %2338 = vpow2.f32 %v1181_v16  ;;  %v1165_v20 = vsub.f32 %v1121_v62, %v1151_v18  ;;  %v1329_v18 = vld [vmem:[#allocation3 + $0xc] sm:$0x1] }
 0x4c3   : > { %v1185_v21 = vpack.c.bf16 %v2331_v19, %v2329_v17 }
 0x4c4   : > { %v1177_v22 = vmul.f32 1.442695, %v1165_v20  ;;  %v2333_v29 = vpop.eup %2332 }
 0x4c5   : > { %v1154_v25 = vpop.xlane.xlu1 %1153  ;;  %v1193_v26 = vsel %vm1136_vm9, %v1185_v21, 0 }
 0x4c6   : > { %v1166_v28 = vsub.f32 %v1124_v0, %v1154_v25  ;;  %2220 = vmatpush3.bf16.xpose.msra.mxu1 %v1193_v26  ;;  %2340 = vpow2.f32 %v1177_v22 }
 0x4c7   : > { %2221 = vmatprep.subr.bf16.mxu1 %v2520_v8 }
 0x4c8   : > { %v2335_v30 = vpop.eup %2334  ;;  %v1179_v31 = vmul.f32 1.442695, %v1166_v28 }
 0x4c9   : > { %v1186_v33 = vpack.c.bf16 %v2335_v30, %v2333_v29  ;;  %v2337_v34 = vpop.eup %2336  ;;  %v973_v49 = vpop.permute.xlu1 %972 }
 0x4ca   : > { %2342 = vpow2.f32 %v1179_v31  ;;  %v1031_v52 = vadd.f32 %v3065_v44, %v973_v49 }
 0x4cb   : > { %v1196_v36 = vsel %vm1136_vm9, %v1186_v33, 0 }
 0x4cc   : > { %v2339_v35 = vpop.eup %2338  ;;  %v1035_v53 = vpack.c.bf16 %v1031_v52, %v1031_v52 }
 0x4cd   : > { %v1188_v39 = vpack.c.bf16 %v2337_v34, %v2339_v35 }
 0x4ce   : > { %2222 = vmatpush3.bf16.xpose.msra.mxu1 %v1196_v36 }
 0x4cf   : > { %2223 = vmatprep.subr.bf16.mxu1 %v2520_v8  ;;  %v1202_v51 = vsel %vm1136_vm9, %v1188_v39, 0 }
 0x4d0   : > { %v2341_v40 = vpop.eup %2340 }
 0x4d4   : > { %v2343_v41 = vpop.eup %2342 }
 0x4d5   : > { %v1187_v45 = vpack.c.bf16 %v2343_v41, %v2341_v40 }
 0x4d7   : > { %v1199_v48 = vsel %vm1136_vm9, %v1187_v45, 0 }
 0x4d8   : > { %2224 = vmatpush3.bf16.xpose.msra.mxu1 %v1199_v48 }
 0x4d9   : > { %2225 = vmatprep.subr.bf16.mxu1 %v2520_v8 }
 0x4e0   : > { %2226 = vmatpush3.bf16.xpose.msra.mxu1 %v1202_v51 }
 0x4e7   : > { %2228 = vmatmul.mubr.msk.bf16.vlgmr.msra.gmra.mrb[8].mxu1 %vm1136_vm9, %v1035_v53  ;;  %vm3569_vm9 = vcmask 123969  }
 0x5ba   : > { %v1238_v54 = vpop.f32.mrb[8].mxu1 }
 0x5bb   : > { %2344 = vrcp.f32 %v1238_v54  ;;  %v2229_v56 = vpop.f32.mrb[9].mxu1 }
 0x5bc   : > { %v1241_v57 = vpop.f32.mrb[10].mxu1 }
 0x5bd   : > { %v2230_v58 = vpop.f32.mrb[11].mxu1 }
 0x5c5   : > { %v2345_v8 = vpop.eup %2344 }
 0x5c6   : > { %v1248_v42 = vrot.slane %v2345_v8, %v1247_v60 }
 0x5c8   : > { %v1249_v62 = vmul.f32 %v1248_v42, %v1238_v54 }
 0x5ca   : > { %v1250_v44 = vmul.f32 0.25, %v1249_v62  ;;  %v1251_v0 = vmul.f32 0.75, %v1249_v62 }
 0x5cc   : > { %v1252_v43 = vadd.f32 %v1251_v0, %v1250_v44  ;;  %1424 = vrot.lane.b32.xlu0 %v1251_v0, %s2525_s18  ;;  %1333 = vrot.lane.b32.xlu1 %v1250_v44, %s2525_s18 }
 0x5ce   : > { %v1253_v1 = vpack.c.bf16 %v1252_v43, %v1252_v43 }
 0x5d0   : > { %v1261_v2 = vrot.slane %v1253_v1, %v3088_v38 }
 0x5d2   : > { %v1269_v4 = vrot.slane %v1261_v2, %v3088_v38  ;;  %v1262_v46 = vcombine.high %v1261_v2, %v1261_v2  ;;  %v1541_v2 = vld [vmem:[#allocation3 + $0x4] sm:$0x2] }
 0x5d4   : > { %v2120_v5 = vpack.i.b16 %v1269_v4, %v1269_v4  ;;  %v1278_v6 = vunpack.i.h.s16 %v1269_v4  ;;  %v1276_v27 = vrot.slane %v1262_v46, %v3088_v38 }
 0x5d6   : > { %v1291_v24 = vrot.slane %v2120_v5, %v3093_v3  ;;  %v1282_v9 = vpack.i.b16 %v1278_v6, %v1278_v6  ;;  %v2121_v10 = vpack.i.b16 %v1276_v27, %v1276_v27  ;;  %v1280_v11 = vunpack.i.h.s16 %v1276_v27  ;;  %v1642_v5 = vld [vmem:[#allocation3] sm:$0x4] }
 0x5d8   : > { %1810 = vrot.lane.b32.xlu1 %v1291_v24, %s2526_s20  ;;  %v1298_v14 = vrot.slane %v1282_v9, %v3093_v3  ;;  %v3107_v15 = vrot.slane %v2121_v10, %v3093_v3  ;;  %v1284_v16 = vpack.i.b16 %v1280_v11, %v1280_v11  ;;  %v1321_v17 = vsel %vm3099_vm1, %v1291_v24, %v1320_v23  ;;  %v1746_v10 = vld [vmem:[#allocation3] sm:$0x8] }
 0x5d9   : > { %1322 = vst [vmem:[#allocation3] sm:$0x1] %v1321_v17 }
 0x5da   : > { %1812 = vrot.lane.b32.xlu0 %v1298_v14, %s2526_s20  ;;  %v3113_v19 = vrot.slane %v1284_v16, %v3093_v3  ;;  %v1324_v20 = vsel %vm3099_vm1, %v1298_v14, %v1323_v12  ;;  %v1327_v21 = vsel %vm3099_vm1, %v3107_v15, %v1326_v13  ;;  %v1749_v13 = vld [vmem:[#allocation3 + $0x4] sm:$0x8] }
 0x5db   : > { %1325 = vst [vmem:[#allocation3 + $0x4] sm:$0x1] %v1324_v20  ;;  %1328 = vst [vmem:[#allocation3 + $0x8] sm:$0x1] %v1327_v21 }
 0x5dc   : > { %v1330_v22 = vsel %vm3099_vm1, %v3113_v19, %v1329_v18  ;;  %vm3300_vm1 = vmand %vm3569_vm9, %vm1536_vm3 }
 0x5dd   : > { %1331 = vst [vmem:[#allocation3 + $0xc] sm:$0x1] %v1330_v22  ;;  %vm3310_vm3 = vmand %vm3572_vm15, %vm1640_vm6  ;;  %vm1588_vm6 = vsmask.f32 7942 }
 0x5de   : > { %vm3316_vm9 = vmand %vm1317_vm14, %vm1492_vm0 }
 0x5df   : > { %vm3329_vm14 = vmand %vm3571_vm8, %vm1744_vm10  ;;  %vm3573_vm8 = vsmask.f32 7946 }
 0x5e0   : > { %vm3342_vm10 = vmand %vm1535_vm2, %vm1588_vm6 }
 0x5e1   : > { %vm3350_vm15 = vmand %vm1409_vm12, %vm1492_vm0  ;;  %vm3576_vm0 = vsmask.f32 7950 }
 0x5e2   : > { %v1414_v22 = vld [vmem:[#allocation3 + $0x4] sm:$0x1]  ;;  %vm3358_vm2 = vmand %vm1639_vm5, %vm3573_vm8  ;;  %vm3624_vm5 = vcmask 60419   ;;  %vm3627_vm8 = vcmask 123969  }
 0x5e3   : > { %vm3374_vm12 = vmand %vm3624_vm5, %vm3576_vm0  ;;  %vm3630_vm5 = vsmask.f32 7946  ;;  %vm3631_vm0 = vcmask 124994  }
 0x63e   : > { %v1425_v25 = vpop.permute.xlu0 %1424  ;;  %v1334_v26 = vpop.permute.xlu1 %1333 }
 0x63f   : > { %v1427_v28 = vadd.f32 %v1425_v25, %v1250_v44  ;;  %v1336_v29 = vadd.f32 %v1334_v26, %v1251_v0  ;;  %v2326_v44 = vld [vmem:[%s3556_s6] sm:$0xff]  }
 0x640   : > { %2231 = vmatprep.subr.bf16.mxu0 %v2326_v44 }
 0x641   : > { %v1428_v30 = vpack.c.bf16 %v1427_v28, %v1427_v28  ;;  %v1337_v33 = vpack.c.bf16 %v1336_v29, %v1336_v29  ;;  %2232 = vmatpush3.bf16.msra.mxu0 %v2326_v44 }
 0x643   : > { %v1436_v31 = vrot.slane %v1428_v30, %v3088_v38  ;;  %v1345_v39 = vrot.slane %v1337_v33, %v3088_v38 }
 0x645   : > { %v1444_v34 = vrot.slane %v1436_v31, %v3088_v38  ;;  %v1353_v48 = vrot.slane %v1345_v39, %v3088_v38  ;;  %v1437_v55 = vcombine.high %v1436_v31, %v1436_v31  ;;  %v1346_v60 = vcombine.high %v1345_v39, %v1345_v39 }
 0x647   : > { %v1453_v35 = vunpack.i.h.s16 %v1444_v34  ;;  %v2124_v36 = vpack.i.b16 %v1444_v34, %v1444_v34  ;;  %v1362_v49 = vunpack.i.h.s16 %v1353_v48  ;;  %v2122_v51 = vpack.i.b16 %v1353_v48, %v1353_v48 }
 0x648   : > { %v1451_v56 = vrot.slane %v1437_v55, %v3088_v38  ;;  %v1360_v8 = vrot.slane %v1346_v60, %v3088_v38 }
 0x649   : > { %v1457_v40 = vpack.i.b16 %v1453_v35, %v1453_v35  ;;  %v3127_v41 = vrot.slane %v2124_v36, %v3093_v3  ;;  %v1366_v52 = vpack.i.b16 %v1362_v49, %v1362_v49  ;;  %v3144_v53 = vrot.slane %v2122_v51, %v3093_v3 }
 0x64a   : > { %v1455_v57 = vunpack.i.h.s16 %v1451_v56  ;;  %v2125_v58 = vpack.i.b16 %v1451_v56, %v1451_v56  ;;  %v1364_v42 = vunpack.i.h.s16 %v1360_v8  ;;  %v2123_v62 = vpack.i.b16 %v1360_v8, %v1360_v8  ;;  %v3256_v0 = vpop.permute.xlu1 %1810 }
 0x64b   : > { %v3130_v45 = vrot.slane %v1457_v40, %v3093_v3  ;;  %1523 = vrot.lane.b32.xlu1 %v3127_v41, %s2525_s18  ;;  %v3149_v54 = vrot.slane %v1366_v52, %v3093_v3 }
 0x64c   : > { %v1459_v59 = vpack.i.b16 %v1455_v57, %v1455_v57  ;;  %v3187_v61 = vrot.slane %v2125_v58, %v3093_v3  ;;  %v1368_v63 = vpack.i.b16 %v1364_v42, %v1364_v42  ;;  %v3206_v32 = vrot.slane %v2123_v62, %v3093_v3  ;;  %v3258_v43 = vpop.permute.xlu0 %1812 }
 0x64d   : > { %1525 = vrot.lane.b32.xlu0 %v3130_v45, %s2525_s18 }
 0x64e   : > { %v3192_v47 = vrot.slane %v1459_v59, %v3093_v3  ;;  %v3211_v50 = vrot.slane %v1368_v63, %v3093_v3  ;;  %v3618_v63 = vmov 0 }
 0x64f   : > { %1627 = vrot.lane.b32.xlu1 %v3127_v41, %s2527_s14  ;;  %v3619_v63 = vsel %vm3342_vm10, 4294967295, %v3618_v63 }
 0x651   : > { %1629 = vrot.lane.b32.xlu0 %v3130_v45, %s2527_s14 }
 0x653   : > { %1731 = vrot.lane.b32.xlu1 %v3127_v41, %s2528_s21 }
 0x655   : > { %1733 = vrot.lane.b32.xlu0 %v3130_v45, %s2528_s21 }
 0x657   : > { %1397 = vrot.lane.b32.xlu1 %v3144_v53, %s2513_s29 }
 0x659   : > { %1399 = vrot.lane.b32.xlu0 %v3149_v54, %s2513_s29 }
 0x65b   : > { %1550 = vrot.lane.b32.xlu1 %v3144_v53, %s2525_s18 }
 0x65d   : > { %1552 = vrot.lane.b32.xlu0 %v3149_v54, %s2525_s18 }
 0x65f   : > { %1654 = vrot.lane.b32.xlu1 %v3144_v53, %s2527_s14 }
 0x661   : > { %1656 = vrot.lane.b32.xlu0 %v3149_v54, %s2527_s14 }
 0x663   : > { %1758 = vrot.lane.b32.xlu1 %v3144_v53, %s2528_s21 }
 0x665   : > { %1760 = vrot.lane.b32.xlu0 %v3149_v54, %s2528_s21 }
 0x667   : > { %1576 = vrot.lane.b32.xlu1 %v3127_v41, %s2529_s22 }
 0x669   : > { %1578 = vrot.lane.b32.xlu0 %v3130_v45, %s2529_s22 }
 0x66b   : > { %1680 = vrot.lane.b32.xlu1 %v3127_v41, %s2530_s1 }
 0x66d   : > { %1682 = vrot.lane.b32.xlu0 %v3130_v45, %s2530_s1 }
 0x66f   : > { %1784 = vrot.lane.b32.xlu1 %v3127_v41, %s2526_s20 }
 0x671   : > { %1786 = vrot.lane.b32.xlu0 %v3130_v45, %s2526_s20 }
 0x673   : > { %1602 = vrot.lane.b32.xlu1 %v3144_v53, %s2529_s22 }
 0x675   : > { %1604 = vrot.lane.b32.xlu0 %v3149_v54, %s2529_s22 }
 0x677   : > { %1706 = vrot.lane.b32.xlu1 %v3144_v53, %s2530_s1 }
 0x679   : > { %1708 = vrot.lane.b32.xlu0 %v3149_v54, %s2530_s1 }
 0x67b   : > { %1527 = vrot.lane.b32.xlu1 %v3187_v61, %s2525_s18 }
 0x67d   : > { %1529 = vrot.lane.b32.xlu0 %v3192_v47, %s2525_s18 }
 0x67f   : > { %1631 = vrot.lane.b32.xlu1 %v3187_v61, %s2527_s14 }
 0x681   : > { %1633 = vrot.lane.b32.xlu0 %v3192_v47, %s2527_s14 }
 0x683   : > { %1735 = vrot.lane.b32.xlu1 %v3187_v61, %s2528_s21 }
 0x685   : > { %1737 = vrot.lane.b32.xlu0 %v3192_v47, %s2528_s21 }
 0x687   : > { %1401 = vrot.lane.b32.xlu1 %v3206_v32, %s2513_s29 }
 0x689   : > { %1403 = vrot.lane.b32.xlu0 %v3211_v50, %s2513_s29 }
 0x68b   : > { %1554 = vrot.lane.b32.xlu1 %v3206_v32, %s2525_s18 }
 0x68d   : > { %1556 = vrot.lane.b32.xlu0 %v3211_v50, %s2525_s18  ;;  %s2442_s18 = scalar_lea.vmem %s2441_s8, 1024 }
 0x68e   : > { %p2444_p0 = scmp.lt.s32.totalorder %s2442_s18, %s2436_s16 }
 0x68f   : > { %1658 = vrot.lane.b32.xlu1 %v3206_v32, %s2527_s14 }
 0x690   : > { %p2445_p8 = por %p2444_p0, %p2443_p12 }
 0x691   : > { %1660 = vrot.lane.b32.xlu0 %v3211_v50, %s2527_s14 }
 0x692   : > { %p2446_p10 = pnand %p2445_p8, %p2439_p9 }
 0x693   : > { %1762 = vrot.lane.b32.xlu1 %v3206_v32, %s2528_s21 }
 0x695   : > { %1764 = vrot.lane.b32.xlu0 %v3211_v50, %s2528_s21 }
 0x697   : > { %1580 = vrot.lane.b32.xlu1 %v3187_v61, %s2529_s22 }
 0x699   : > { %1582 = vrot.lane.b32.xlu0 %v3192_v47, %s2529_s22 }
 0x69b   : > { %1684 = vrot.lane.b32.xlu1 %v3187_v61, %s2530_s1 }
 0x69d   : > { %1686 = vrot.lane.b32.xlu0 %v3192_v47, %s2530_s1 }
 0x69f   : > { %1788 = vrot.lane.b32.xlu1 %v3187_v61, %s2526_s20 }
 0x6a1   : > { %1790 = vrot.lane.b32.xlu0 %v3192_v47, %s2526_s20 }
 0x6a3   : > { %1606 = vrot.lane.b32.xlu1 %v3206_v32, %s2529_s22 }
 0x6a5   : > { %1608 = vrot.lane.b32.xlu0 %v3211_v50, %s2529_s22 }
 0x6a7   : > { %1710 = vrot.lane.b32.xlu1 %v3206_v32, %s2530_s1 }
 0x6a9   : > { %1712 = vrot.lane.b32.xlu0 %v3211_v50, %s2530_s1 }
 0x6ab   : > { %1814 = vrot.lane.b32.xlu1 %v3107_v15, %s2526_s20 }
 0x6ad   : > { %1816 = vrot.lane.b32.xlu0 %v3113_v19, %s2526_s20  ;;  %v1411_v19 = vld [vmem:[#allocation3] sm:$0x1] }
 0x6bd   : > { %v1524_v1 = vpop.permute.xlu1 %1523 }
 0x6be   : > { %v1539_v3 = vsel %vm3262_vm4, %v1524_v1, %v1538_v37 }
 0x6bf   : > { %1540 = vst [vmem:[#allocation3] sm:$0x2] %v1539_v3  ;;  %v1526_v4 = vpop.permute.xlu0 %1525 }
 0x6c0   : > { %v1542_v6 = vsel %vm3262_vm4, %v1526_v4, %v1541_v2 }
 0x6c1   : > { %1543 = vst [vmem:[#allocation3 + $0x4] sm:$0x2] %v1542_v6  ;;  %v1628_v27 = vpop.permute.xlu1 %1627  ;;  %v3622_v6 = vmov 0 }
 0x6c2   : > { %v1643_v23 = vsel %vm3270_vm7, %v1628_v27, %v1642_v5  ;;  %v3623_v6 = vsel %vm3358_vm2, 4294967295, %v3622_v6 }
 0x6c3   : > { %1644 = vst [vmem:[#allocation3] sm:$0x4] %v1643_v23  ;;  %v1630_v24 = vpop.permute.xlu0 %1629 }
 0x6c4   : > { %v1646_v11 = vsel %vm3270_vm7, %v1630_v24, %v1645_v7 }
 0x6c5   : > { %1647 = vst [vmem:[#allocation3 + $0x4] sm:$0x4] %v1646_v11  ;;  %v1732_v12 = vpop.permute.xlu1 %1731 }
 0x6c6   : > { %v1747_v14 = vsel %vm3280_vm11, %v1732_v12, %v1746_v10  ;;  %v1564_v28 = vld [vmem:[#allocation3] sm:$0x2] }
 0x6c7   : > { %1748 = vst [vmem:[#allocation3] sm:$0x8] %v1747_v14  ;;  %v1734_v15 = vpop.permute.xlu0 %1733 }
 0x6c8   : > { %v1750_v17 = vsel %vm3280_vm11, %v1734_v15, %v1749_v13  ;;  %v1567_v31 = vld [vmem:[#allocation3 + $0x4] sm:$0x2] }
 0x6c9   : > { %1751 = vst [vmem:[#allocation3 + $0x4] sm:$0x8] %v1750_v17  ;;  %v1398_v18 = vpop.permute.xlu1 %1397 }
 0x6ca   : > { %v1412_v20 = vsel %vm3290_vm13, %v1398_v18, %v1411_v19  ;;  %v1668_v39 = vld [vmem:[#allocation3] sm:$0x4] }
 0x6cb   : > { %1413 = vst [vmem:[#allocation3] sm:$0x1] %v1412_v20  ;;  %v1400_v21 = vpop.permute.xlu0 %1399 }
 0x6cc   : > { %v1415_v26 = vsel %vm3290_vm13, %v1400_v21, %v1414_v22  ;;  %v1671_v52 = vld [vmem:[#allocation3 + $0x4] sm:$0x4] }
 0x6cd   : > { %1416 = vst [vmem:[#allocation3 + $0x4] sm:$0x1] %v1415_v26  ;;  %v1551_v29 = vpop.permute.xlu1 %1550 }
 0x6ce   : > { %v1565_v30 = vsel %vm3300_vm1, %v1551_v29, %v1564_v28 }
 0x6cf   : > { %1566 = vst [vmem:[#allocation3] sm:$0x2] %v1565_v30  ;;  %v1553_v33 = vpop.permute.xlu0 %1552 }
 0x6d0   : > { %v1568_v36 = vsel %vm3300_vm1, %v1553_v33, %v1567_v31  ;;  %v1775_v42 = vld [vmem:[#allocation3 + $0x4] sm:$0x8] }
 0x6d1   : > { %1569 = vst [vmem:[#allocation3 + $0x4] sm:$0x2] %v1568_v36  ;;  %v1655_v40 = vpop.permute.xlu1 %1654 }
 0x6d2   : > { %v1494_v48 = vld [vmem:[#allocation3] sm:$0x1]  ;;  %v1669_v49 = vsel %vm3310_vm3, %v1655_v40, %v1668_v39 }
 0x6d3   : > { %v1495_v51 = vsel %vm3316_vm9, %v3127_v41, %v1494_v48  ;;  %1670 = vst [vmem:[#allocation3] sm:$0x4] %v1669_v49  ;;  %v1657_v55 = vpop.permute.xlu0 %1656  ;;  %v1772_v41 = vld [vmem:[#allocation3] sm:$0x8] }
 0x6d4   : > { %1496 = vst [vmem:[#allocation3] sm:$0x1] %v1495_v51  ;;  %v1497_v57 = vld [vmem:[#allocation3 + $0x4] sm:$0x1]  ;;  %v1672_v58 = vsel %vm3310_vm3, %v1657_v55, %v1671_v52 }
 0x6d5   : > { %v1498_v59 = vsel %vm3316_vm9, %v3130_v45, %v1497_v57  ;;  %1673 = vst [vmem:[#allocation3 + $0x4] sm:$0x4] %v1672_v58  ;;  %v1759_v60 = vpop.permute.xlu1 %1758  ;;  %v3620_v45 = vmov 0  ;;  %v1544_v58 = vld [vmem:[#allocation3 + $0x8] sm:$0x2] }
 0x6d6   : > { %1499 = vst [vmem:[#allocation3 + $0x4] sm:$0x1] %v1498_v59  ;;  %v1773_v8 = vsel %vm3329_vm14, %v1759_v60, %v1772_v41  ;;  %v3621_v45 = vsel %vm3350_vm15, 4294967295, %v3620_v45  ;;  %v1590_v37 = vld [vmem:[#allocation3] sm:$0x2] }
 0x6d7   : > { %1774 = vst [vmem:[#allocation3] sm:$0x8] %v1773_v8  ;;  %v1761_v62 = vpop.permute.xlu0 %1760 }
 0x6d8   : > { %v1776_v44 = vsel %vm3329_vm14, %v1761_v62, %v1775_v42  ;;  %v1593_v4 = vld [vmem:[#allocation3 + $0x4] sm:$0x2]  ;;  %v1547_v42 = vld [vmem:[#allocation3 + $0xc] sm:$0x2] }
 0x6d9   : > { %1777 = vst [vmem:[#allocation3 + $0x4] sm:$0x8] %v1776_v44  ;;  %v1577_v1 = vpop.permute.xlu1 %1576  ;;  %v1648_v44 = vld [vmem:[#allocation3 + $0x8] sm:$0x4] }
 0x6da   : > { %v1591_v2 = vsel %vm3342_vm10, %v1577_v1, %v1590_v37  ;;  %v1694_v24 = vld [vmem:[#allocation3] sm:$0x4] }
 0x6db   : > { %v1511_v3 = vld [vmem:[#allocation3] sm:$0x1]  ;;  %1592 = vst [vmem:[#allocation3] sm:$0x2] %v1591_v2  ;;  %v1579_v5 = vpop.permute.xlu0 %1578  ;;  %v1651_v2 = vld [vmem:[#allocation3 + $0xc] sm:$0x4] }
 0x6dc   : > { %v1512_v27 = vsel %vm3350_vm15, %v3144_v53, %v1511_v3  ;;  %v1594_v7 = vsel %vm3342_vm10, %v1579_v5, %v1593_v4  ;;  %v1697_v13 = vld [vmem:[#allocation3 + $0x4] sm:$0x4]  ;;  %v1752_v4 = vld [vmem:[#allocation3 + $0x8] sm:$0x8] }
 0x6dd   : > { %1513 = vst [vmem:[#allocation3] sm:$0x1] %v1512_v27  ;;  %v1514_v23 = vld [vmem:[#allocation3 + $0x4] sm:$0x1]  ;;  %1595 = vst [vmem:[#allocation3 + $0x4] sm:$0x2] %v1594_v7  ;;  %v1681_v10 = vpop.permute.xlu1 %1680 }
 0x6de   : > { %v1515_v11 = vsel %vm3350_vm15, %v3149_v54, %v1514_v23  ;;  %v1695_v12 = vsel %vm3358_vm2, %v1681_v10, %v1694_v24  ;;  %v1798_v17 = vld [vmem:[#allocation3] sm:$0x8]  ;;  %vm3384_vm15 = vmand %vm3627_vm8, %vm1588_vm6  ;;  %vm3634_vm8 = vsmask.f32 7950  ;;  %vm3635_vm6 = vcmask 126019  }
 0x6df   : > { %1516 = vst [vmem:[#allocation3 + $0x4] sm:$0x1] %v1515_v11  ;;  %1696 = vst [vmem:[#allocation3] sm:$0x4] %v1695_v12  ;;  %v1683_v53 = vpop.permute.xlu0 %1682  ;;  %v1755_v7 = vld [vmem:[#allocation3 + $0xc] sm:$0x8] }
 0x6e0   : > { %v1698_v15 = vsel %vm3358_vm2, %v1683_v53, %v1697_v13  ;;  %v1801_v19 = vld [vmem:[#allocation3 + $0x4] sm:$0x8]  ;;  %vm3394_vm2 = vmand %vm3631_vm0, %vm3630_vm5  ;;  %vm1857_vm0 = vcmask 130048   ;;  %v1417_v12 = vld [vmem:[#allocation3 + $0x8] sm:$0x1] }
 0x6e1   : > { %1699 = vst [vmem:[#allocation3 + $0x4] sm:$0x4] %v1698_v15  ;;  %v1785_v18 = vpop.permute.xlu1 %1784  ;;  %vm3400_vm10 = vmand %vm3635_vm6, %vm3634_vm8  ;;  %v1420_v53 = vld [vmem:[#allocation3 + $0xc] sm:$0x1] }
 0x6e2   : > { %v1799_v54 = vsel %vm3374_vm12, %v1785_v18, %v1798_v17  ;;  %v1615_v26 = vld [vmem:[#allocation3] sm:$0x2] }
 0x6e3   : > { %1800 = vst [vmem:[#allocation3] sm:$0x8] %v1799_v54  ;;  %v1787_v20 = vpop.permute.xlu0 %1786 }
 0x6e4   : > { %v1802_v22 = vsel %vm3374_vm12, %v1787_v20, %v1801_v19  ;;  %v1618_v30 = vld [vmem:[#allocation3 + $0x4] sm:$0x2] }
 0x6e5   : > { %1803 = vst [vmem:[#allocation3 + $0x4] sm:$0x8] %v1802_v22  ;;  %v1603_v28 = vpop.permute.xlu1 %1602 }
 0x6e6   : > { %v1616_v29 = vsel %vm3384_vm15, %v1603_v28, %v1615_v26  ;;  %v1719_v40 = vld [vmem:[#allocation3] sm:$0x4] }
 0x6e7   : > { %1617 = vst [vmem:[#allocation3] sm:$0x2] %v1616_v29  ;;  %v1605_v31 = vpop.permute.xlu0 %1604 }
 0x6e8   : > { %v1619_v39 = vsel %vm3384_vm15, %v1605_v31, %v1618_v30  ;;  %v1722_v55 = vld [vmem:[#allocation3 + $0x4] sm:$0x4] }
 0x6e9   : > { %1620 = vst [vmem:[#allocation3 + $0x4] sm:$0x2] %v1619_v39  ;;  %v1707_v48 = vpop.permute.xlu1 %1706 }
 0x6ea   : > { %v1823_v49 = vld [vmem:[#allocation3] sm:$0x8]  ;;  %v1720_v51 = vsel %vm3394_vm2, %v1707_v48, %v1719_v40 }
 0x6eb   : > { %v1824_v52 = vsel %vm3400_vm10, %v3256_v0, %v1823_v49  ;;  %1721 = vst [vmem:[#allocation3] sm:$0x4] %v1720_v51  ;;  %v1709_v57 = vpop.permute.xlu0 %1708 }
 0x6ec   : > { %1825 = vst [vmem:[#allocation3] sm:$0x8] %v1824_v52  ;;  %v1826_v59 = vld [vmem:[#allocation3 + $0x4] sm:$0x8]  ;;  %v1723_v41 = vsel %vm3394_vm2, %v1709_v57, %v1722_v55 }
 0x6ed   : > { %v1827_v60 = vsel %vm3400_vm10, %v3258_v43, %v1826_v59  ;;  %1724 = vst [vmem:[#allocation3 + $0x4] sm:$0x4] %v1723_v41  ;;  %v1528_v8 = vpop.permute.xlu1 %1527 }
 0x6ee   : > { %1828 = vst [vmem:[#allocation3 + $0x4] sm:$0x8] %v1827_v60  ;;  %v1545_v0 = vsel %vm3262_vm4, %v1528_v8, %v1544_v58 }
 0x6ef   : > { %1546 = vst [vmem:[#allocation3 + $0x8] sm:$0x2] %v1545_v0  ;;  %v1530_v62 = vpop.permute.xlu0 %1529 }
 0x6f0   : > { %v1548_v37 = vsel %vm3262_vm4, %v1530_v62, %v1547_v42  ;;  %vm3638_vm4 = vnez %v3619_v63 }
 0x6f1   : > { %1549 = vst [vmem:[#allocation3 + $0xc] sm:$0x2] %v1548_v37  ;;  %v1632_v1 = vpop.permute.xlu1 %1631 }
 0x6f2   : > { %v1649_v3 = vsel %vm3270_vm7, %v1632_v1, %v1648_v44 }
 0x6f3   : > { %1650 = vst [vmem:[#allocation3 + $0x8] sm:$0x4] %v1649_v3  ;;  %v1634_v43 = vpop.permute.xlu0 %1633 }
 0x6f4   : > { %v1652_v5 = vsel %vm3270_vm7, %v1634_v43, %v1651_v2  ;;  %vm3639_vm7 = vnez %v3621_v45 }
 0x6f5   : > { %1653 = vst [vmem:[#allocation3 + $0xc] sm:$0x4] %v1652_v5  ;;  %v1736_v27 = vpop.permute.xlu1 %1735  ;;  %v2325_v23 = vld [vmem:[#allocation3] sm:$0xff]  }
 0x6f6   : > { %v1753_v38 = vsel %vm3280_vm11, %v1736_v27, %v1752_v4  ;;  %2233 = vmatprep.mubr.msk.bf16.mxu0 %vm1857_vm0, %v2325_v23  ;;  %v1570_v17 = vld [vmem:[#allocation3 + $0x8] sm:$0x2] }
 0x6f7   : > { %1754 = vst [vmem:[#allocation3 + $0x8] sm:$0x8] %v1753_v38  ;;  %v1738_v24 = vpop.permute.xlu0 %1737 }
 0x6f8   : > { %v1756_v10 = vsel %vm3280_vm11, %v1738_v24, %v1755_v7  ;;  %v1573_v9 = vld [vmem:[#allocation3 + $0xc] sm:$0x2]  ;;  %vm3640_vm11 = vnez %v3623_v6 }
 0x6f9   : > { %1757 = vst [vmem:[#allocation3 + $0xc] sm:$0x8] %v1756_v10  ;;  %v1402_v11 = vpop.permute.xlu1 %1401 }
 0x6fa   : > { %v1418_v46 = vsel %vm3290_vm13, %v1402_v11, %v1417_v12  ;;  %v1674_v22 = vld [vmem:[#allocation3 + $0x8] sm:$0x4] }
 0x6fb   : > { %1419 = vst [vmem:[#allocation3 + $0x8] sm:$0x1] %v1418_v46  ;;  %v1404_v13 = vpop.permute.xlu0 %1403 }
 0x6fc   : > { %v1421_v15 = vsel %vm3290_vm13, %v1404_v13, %v1420_v53  ;;  %v1677_v30 = vld [vmem:[#allocation3 + $0xc] sm:$0x4]  ;;  %vm3641_vm13 = vcmask 261120  }
 0x6fd   : > { %1422 = vst [vmem:[#allocation3 + $0xc] sm:$0x1] %v1421_v15  ;;  %v1555_v18 = vpop.permute.xlu1 %1554 }
 0x6fe   : > { %v1571_v54 = vsel %vm3300_vm1, %v1555_v18, %v1570_v17  ;;  %v1778_v48 = vld [vmem:[#allocation3 + $0x8] sm:$0x8]  ;;  %v1915_v17 = vld [vmem:[%s2772_s27 + $0x10] sm:$0xff] }
 0x6ff   : > { %1572 = vst [vmem:[#allocation3 + $0x8] sm:$0x2] %v1571_v54  ;;  %v1557_v19 = vpop.permute.xlu0 %1556  ;;  %v1919_v18 = vld [vmem:[%s2780_s30 + $0x10] sm:$0xff]  ;;  %v1913_v54 = vld [vmem:[%s2772_s27] sm:$0xff] }
 0x700   : > { %v1574_v20 = vsel %vm3300_vm1, %v1557_v19, %v1573_v9  ;;  %v1917_v9 = vld [vmem:[%s2780_s30] sm:$0xff]  ;;  %v1916_v19 = vld [vmem:[%s2772_s27 + $0x18] sm:$0xff] }
 0x701   : > { %1575 = vst [vmem:[#allocation3 + $0xc] sm:$0x2] %v1574_v20  ;;  %v1659_v26 = vpop.permute.xlu1 %1658  ;;  %v1920_v20 = vld [vmem:[%s2780_s30 + $0x18] sm:$0xff]  ;;  %v1921_v36 = vadd.f32 %v1917_v9, %v1913_v54 }
 0x702   : > { %v1500_v28 = vld [vmem:[#allocation3 + $0x8] sm:$0x1]  ;;  %v1675_v16 = vsel %vm3310_vm3, %v1659_v26, %v1674_v22  ;;  %v1923_v22 = vadd.f32 %v1919_v18, %v1915_v17  ;;  %v1914_v26 = vld [vmem:[%s2772_s27 + $0x8] sm:$0xff]  ;;  %s2151_s27 = sshll.u32 %s2594_s28, 9  ;;  %s1942_s28 = scalar_lea.sflag [#allocation6], %s2765_s9 }
 0x703   : > { %v1501_v29 = vsel %vm3316_vm9, %v3187_v61, %v1500_v28  ;;  %1676 = vst [vmem:[#allocation3 + $0x8] sm:$0x4] %v1675_v16  ;;  %v1661_v31 = vpop.permute.xlu0 %1660  ;;  %v1781_v61 = vld [vmem:[#allocation3 + $0xc] sm:$0x8]  ;;  %v1918_v28 = vld [vmem:[%s2780_s30 + $0x8] sm:$0xff]  ;;  %v1927_v16 = vld [vmem:[%s2815_s17 + $0x10] sm:$0xff] }
 0x704   : > { %1502 = vst [vmem:[#allocation3 + $0x8] sm:$0x1] %v1501_v29  ;;  %v1503_v39 = vld [vmem:[#allocation3 + $0xc] sm:$0x1]  ;;  %v1678_v25 = vsel %vm3310_vm3, %v1661_v31, %v1677_v30  ;;  %v1925_v29 = vld [vmem:[%s2815_s17] sm:$0xff]  ;;  %v1924_v30 = vadd.f32 %v1920_v20, %v1916_v19 }
 0x705   : > { %v1504_v40 = vsel %vm3316_vm9, %v3192_v47, %v1503_v39  ;;  %1679 = vst [vmem:[#allocation3 + $0xc] sm:$0x4] %v1678_v25  ;;  %v1763_v49 = vpop.permute.xlu1 %1762  ;;  %v1928_v31 = vld [vmem:[%s2815_s17 + $0x18] sm:$0xff]  ;;  %v1922_v39 = vadd.f32 %v1918_v28, %v1914_v26  ;;  %v1931_v25 = vadd.f32 %v1927_v16, %v1923_v22  ;;  %vm3642_vm9 = vmmov %vm3641_vm13 }
 0x706   : > { %1505 = vst [vmem:[#allocation3 + $0xc] sm:$0x1] %v1504_v40  ;;  %v1779_v51 = vsel %vm3329_vm14, %v1763_v49, %v1778_v48  ;;  %v1596_v34 = vld [vmem:[#allocation3 + $0x8] sm:$0x2]  ;;  %v1926_v40 = vld [vmem:[%s2815_s17 + $0x8] sm:$0xff]  ;;  %v1929_v48 = vadd.f32 %v1925_v29, %v1921_v36  ;;  %v1932_v49 = vadd.f32 %v1928_v31, %v1924_v30  ;;  %s3503_s17 = scalar_lea.hbm %s3557_s7, %s2151_s27  ;;  %vm3643_vm1 = vmmov %vm3642_vm9 }
 0x707   : > { %1780 = vst [vmem:[#allocation3 + $0x8] sm:$0x8] %v1779_v51  ;;  %v1765_v52 = vpop.permute.xlu0 %1764 }
 0x708   : > { %v1782_v55 = vsel %vm3329_vm14, %v1765_v52, %v1781_v61  ;;  %v1599_v58 = vld [vmem:[#allocation3 + $0xc] sm:$0x2]  ;;  %v1930_v61 = vadd.f32 %v1926_v40, %v1922_v39 }
 0x709   : > { %1783 = vst [vmem:[#allocation3 + $0xc] sm:$0x8] %v1782_v55  ;;  %v1581_v57 = vpop.permute.xlu1 %1580 }
 0x70a   : > { %v1597_v35 = vsel %vm3638_vm4, %v1581_v57, %v1596_v34  ;;  %v1700_v8 = vld [vmem:[#allocation3 + $0x8] sm:$0x4] }
 0x70b   : > { %v1517_v47 = vld [vmem:[#allocation3 + $0x8] sm:$0x1]  ;;  %1598 = vst [vmem:[#allocation3 + $0x8] sm:$0x2] %v1597_v35  ;;  %v1583_v59 = vpop.permute.xlu0 %1582 }
 0x70c   : > { %v1518_v41 = vsel %vm3639_vm7, %v3206_v32, %v1517_v47  ;;  %v1600_v60 = vsel %vm3638_vm4, %v1583_v59, %v1599_v58  ;;  %v1703_v44 = vld [vmem:[#allocation3 + $0xc] sm:$0x4] }
 0x70d   : > { %1519 = vst [vmem:[#allocation3 + $0x8] sm:$0x1] %v1518_v41  ;;  %v1520_v56 = vld [vmem:[#allocation3 + $0xc] sm:$0x1]  ;;  %1601 = vst [vmem:[#allocation3 + $0xc] sm:$0x2] %v1600_v60  ;;  %v1685_v42 = vpop.permute.xlu1 %1684 }
 0x70e   : > { %v1521_v0 = vsel %vm3639_vm7, %v3211_v50, %v1520_v56  ;;  %v1701_v62 = vsel %vm3640_vm11, %v1685_v42, %v1700_v8  ;;  %v1804_v63 = vld [vmem:[#allocation3 + $0x8] sm:$0x8] }
 0x70f   : > { %1522 = vst [vmem:[#allocation3 + $0xc] sm:$0x1] %v1521_v0  ;;  %1702 = vst [vmem:[#allocation3 + $0x8] sm:$0x4] %v1701_v62  ;;  %v1687_v37 = vpop.permute.xlu0 %1686 }
 0x710   : > { %v1704_v32 = vsel %vm3640_vm11, %v1687_v37, %v1703_v44  ;;  %v1807_v3 = vld [vmem:[#allocation3 + $0xc] sm:$0x8] }
 0x711   : > { %1705 = vst [vmem:[#allocation3 + $0xc] sm:$0x4] %v1704_v32  ;;  %v1789_v1 = vpop.permute.xlu1 %1788 }
 0x712   : > { %v1805_v2 = vsel %vm3374_vm12, %v1789_v1, %v1804_v63  ;;  %v1621_v43 = vld [vmem:[#allocation3 + $0x8] sm:$0x2] }
 0x713   : > { %1806 = vst [vmem:[#allocation3 + $0x8] sm:$0x8] %v1805_v2  ;;  %v1791_v45 = vpop.permute.xlu0 %1790 }
 0x714   : > { %v1808_v50 = vsel %vm3374_vm12, %v1791_v45, %v1807_v3  ;;  %v1624_v6 = vld [vmem:[#allocation3 + $0xc] sm:$0x2] }
 0x715   : > { %1809 = vst [vmem:[#allocation3 + $0xc] sm:$0x8] %v1808_v50  ;;  %v1607_v4 = vpop.permute.xlu1 %1606 }
 0x716   : > { %v1622_v5 = vsel %vm3384_vm15, %v1607_v4, %v1621_v43  ;;  %v1725_v23 = vld [vmem:[#allocation3 + $0x8] sm:$0x4] }
 0x717   : > { %1623 = vst [vmem:[#allocation3 + $0x8] sm:$0x2] %v1622_v5  ;;  %v1609_v27 = vpop.permute.xlu0 %1608 }
 0x718   : > { %v1625_v7 = vsel %vm3384_vm15, %v1609_v27, %v1624_v6  ;;  %v1728_v14 = vld [vmem:[#allocation3 + $0xc] sm:$0x4]  ;;  %vm3644_vm15 = vmmov %vm3643_vm1 }
 0x719   : > { %1626 = vst [vmem:[#allocation3 + $0xc] sm:$0x2] %v1625_v7  ;;  %v1711_v38 = vpop.permute.xlu1 %1710 }
 0x71a   : > { %v1726_v24 = vsel %vm3394_vm2, %v1711_v38, %v1725_v23  ;;  %v1829_v21 = vld [vmem:[#allocation3 + $0x8] sm:$0x8] }
 0x71b   : > { %1727 = vst [vmem:[#allocation3 + $0x8] sm:$0x4] %v1726_v24  ;;  %v1713_v10 = vpop.permute.xlu0 %1712 }
 0x71c   : > { %v1729_v11 = vsel %vm3394_vm2, %v1713_v10, %v1728_v14  ;;  %v1832_v13 = vld [vmem:[#allocation3 + $0xc] sm:$0x8] }
 0x71d   : > { %1730 = vst [vmem:[#allocation3 + $0xc] sm:$0x4] %v1729_v11  ;;  %v1815_v12 = vpop.permute.xlu1 %1814 }
 0x71e   : > { %v1830_v46 = vsel %vm3400_vm10, %v1815_v12, %v1829_v21 }
 0x71f   : > { %1831 = vst [vmem:[#allocation3 + $0x8] sm:$0x8] %v1830_v46  ;;  %v1817_v53 = vpop.permute.xlu0 %1816 }
 0x720   : > { %v1833_v33 = vsel %vm3400_vm10, %v1817_v53, %v1832_v13 }
 0x721   : > { %1834 = vst [vmem:[#allocation3 + $0xc] sm:$0x8] %v1833_v33 }
 0x728   : > { %v2327_v15 = vld [vmem:[#allocation3 + $0x8] sm:$0xff]  }
 0x729   : > { %2234 = vmatmul.mubr.msk.bf16.vlgmr.msra.gmra.mrb[16].mxu0 %vm1857_vm0, %v2327_v15 }
 0x7fc   : > { %v2235_v51 = vpop.f32.mrb[16].mxu0 }
 0x7fd   : > { %v1935_v52 = vadd.f32 %v2235_v51, %v1931_v25  ;;  %v1898_v55 = vpop.f32.mrb[17].mxu0 }
 0x7fe   : > { %v1933_v34 = vadd.f32 %v1929_v48, %v1898_v55  ;;  %v2236_v57 = vpop.f32.mrb[18].mxu0 }
 0x7ff   : > { %1939 = vst.msk [vmem:[%s373_s11 + $0x10] sm:$0xff] %vm3641_vm13, %v1935_v52  ;;  %v1936_v35 = vadd.f32 %v2236_v57, %v1932_v49  ;;  %v1901_v47 = vpop.f32.mrb[19].mxu0 }
 0x800   : > { %1937 = vst.msk [vmem:[%s373_s11] sm:$0xff] %vm3642_vm9, %v1933_v34  ;;  %v1934_v58 = vadd.f32 %v1930_v61, %v1901_v47 }
 0x801   : > { %1940 = vst.msk [vmem:[%s373_s11 + $0x18] sm:$0xff] %vm3643_vm1, %v1936_v35 }
 0x802   : > { %1938 = vst.msk [vmem:[%s373_s11 + $0x8] sm:$0xff] %vm3644_vm15, %v1934_v58 }
 0x803   : > { %2449 = shalt.err (!%p2446_p10)
}
 0x804   : > { %s2450_s20 = scalar_lea.hbm %s3503_s17, 512  ;;  %s2454_s22 = scalar_lea.hbm %s3557_s7, 1024 }
 0x805   : > { %p2451_p11 = scmp.ne.s32.totalorder %s3503_s17, %s2450_s20  ;;  %p2455_p5 = scmp.lt.u32.totalorder %s3503_s17, %s3557_s7 }
 0x806   : > { %p2456_p2 = scmp.lt.u32.totalorder %s2454_s22, %s2450_s20  ;;  %p2458_p13 = scmp.lt.u32.totalorder %s2450_s20, %s3503_s17 }
 0x807   : > { %p2452_p4 = pnand %p2451_p11, %p3645_p7 }
 0x808   : > { %p2457_p1 = por %p2456_p2, %p2455_p5 }
 0x809   : > { %p2453_p3 = pneg %p2452_p4 }
 0x80a   : > { %p2459_p6 = por %p2458_p13, %p2457_p1 }
 0x80c   : > { %p2460_p9 = pnand %p2459_p6, %p2453_p3 }
 0x80e   : > { %2463 = shalt.err (!%p2460_p9)
}
 0x80f   : > { %s2532_s23 = smov 128  }
 0x810   : > { %2244 = dma.vmem_to_hbm [thread:$0]  (%p3645_p7), %s3497_s15, 512, %s3503_s17, %s1942_s28, %s2532_s23, %s2532_s23, %s2513_s29  }
 0x811 PF: > { %s3646_s11 = sld [smem:[#allocation14_spill]]  ;;  %s1970_s27 = sand.u32 1, %s2494_s24  }
 0x812   : > { %p3647_p12 = scmp.ne.s32.totalorder %s3588_s13, 0  ;;  %s1971_s10 = scalar_lea.sflag [#allocation6], %s1970_s27 }
 0x817   : > { %p3648_p0 = scmp.ge.s32.totalorder %s3646_s11, 2 }
 0x819   : > { %p2257_p8 = pnand %p3648_p0, %p3647_p12 }
 0x81b   : > { %2489 = dma.done.wait (!%p2257_p8), %s1971_s10, 512  }
 0x81c   : > { %2491 = vsyncadd (!%p2257_p8), %s1971_s10, 4294966784  ;;  %s3649_s27 = sld [smem:[#allocation15_spill]]  ;;  %s3650_s12 = sld [smem:[#allocation16_spill]] }
 0x81d   : > { %s3651_s24 = smov %s2498_s25  ;;  %s3652_s25 = smov %s2502_s26 }
 0x822   : > { %p23_p10 = scmp.ge.s32.totalorder %s3649_s27, 4   ;;  %s3653_s26 = smov %s3650_s12 }
 0x824   :  { %25 = sbr.rel (!%p23_p10) target bundleno = 10 (0xa), region = 117 }
 0x82b   :  { %1976 = vsyncpa [#allocation5], 1 }
 0x82c   :  { %1978 = vsyncpa [#allocation5 + $0x1], 1 }
 0x82d   :  { %1979 = vsyncpa [#allocation8], 1 }
 0x82e   :  { %1981 = vsyncpa [#allocation8 + $0x1], 1 }
 0x82f   :  { %1982 = vsyncpa [#allocation6], 1 }
 0x830   :  { %1984 = vsyncpa [#allocation6 + $0x1], 1 }

</bundles_post_ra>
